<compile_context>
chip_gen: v5e
topology: v5e:2x2
jax: 0.10.0
libtpu: 0.0.40
codegen_flags: <defaults>
</compile_context>

<pallas_src>
import math
from functools import partial

import jax
import jax.numpy as jnp
from jax.experimental import pallas as pl
from jax.experimental.pallas import tpu as pltpu


# ----------------------------- kernel helpers ------------------------------

def _layer_norm(x, g, b, eps=1e-5):
    # PyTorch nn.LayerNorm: biased variance, eps inside the sqrt.  rsqrt -> EUP slot.
    mu = jnp.mean(x, axis=-1, keepdims=True)
    xc = x - mu
    var = jnp.mean(xc * xc, axis=-1, keepdims=True)
    return xc * jax.lax.rsqrt(var + eps) * g + b


# ------------------------------- fused kernel --------------------------------

def vit_fwd_kernel(patches_ref, proj_w_ref, proj_b_ref, cls_pos_ref, pos_patch_ref,
                   ln1g_ref, ln1b_ref, wq_ref, wk_ref, wv_ref,
                   bq_ref, bk_ref, bv_ref, wo_ref, bo_ref,
                   ln2g_ref, ln2b_ref, w1_ref, b1_ref, w2_ref, b2_ref,
                   normg_ref, normb_ref,
                   o_ref, x_ref,
                   *, num_heads, num_patches, seq_len, seq_pad, batch_block):
    f32, bf16 = jnp.float32, jnp.bfloat16
    l = pl.program_id(1)

    BB = batch_block
    N = num_patches
    S = seq_len                       # real tokens per image (N patches + 1 CLS)
    Sp = seq_pad                      # padded to a multiple of 8 sublanes
    E = proj_w_ref.shape[1]
    nh = num_heads
    dh = E // nh
    M = BB * Sp                       # token rows per grid step (flat over the block)
    scale = 1.0 / math.sqrt(dh)

    # ---- layer 0: patch embedding (conv == matmul) + CLS + positional embedding ----
    @pl.when(l == 0)
    def _():
        tok = jnp.dot(patches_ref[0], proj_w_ref[...],
                      preferred_element_type=f32)                  # (BB*N, E)
        tok = tok.reshape(BB, N, E) + proj_b_ref[...] + pos_patch_ref[...]
        cls_rows = jnp.broadcast_to(cls_pos_ref[...].reshape(1, 1, E), (BB, 1, E))
        pieces = [cls_rows, tok]
        if Sp > S:
            pieces.append(jnp.zeros((BB, Sp - S, E), f32))         # padded rows
        x_ref[...] = jnp.concatenate(pieces, axis=1).reshape(M, E)

    # In-kernel key-padding bias (O(Sp), generated with iota; no (B*S,B*S) mask input).
    if Sp > S:
        col = jax.lax.broadcasted_iota(jnp.int32, (1, 1, Sp), 2)
        key_bias = jnp.where(col < S, 0.0, -1e30).astype(f32)
    else:
        key_bias = None

    x = x_ref[...]                                                 # (M, E) f32

    # ------------------- transformer layer `l` (weights streamed) -------------------
    # --- attention block:  x = x + MHA(LN1(x)) ---
    h = _layer_norm(x, ln1g_ref[0], ln1b_ref[0]).astype(bf16)
    q = jnp.dot(h, wq_ref[0], preferred_element_type=f32) + bq_ref[0]   # (M, E)
    k = jnp.dot(h, wk_ref[0], preferred_element_type=f32) + bk_ref[0]
    v = jnp.dot(h, wv_ref[0], preferred_element_type=f32) + bv_ref[0]
    q = q.reshape(BB, Sp, E).astype(bf16)      # leading-dim split (Sp % 8 == 0): no relayout
    k = k.reshape(BB, Sp, E).astype(bf16)
    v = v.reshape(BB, Sp, E).astype(bf16)

    heads = []
    for hh in range(nh):                       # small static loop; dots batched over images
        sl = slice(hh * dh, (hh + 1) * dh)
        s = jnp.einsum('bqd,bkd->bqk', q[:, :, sl], k[:, :, sl],
                       preferred_element_type=f32) * scale         # (BB, Sp, Sp) f32
        if key_bias is not None:
            s = s + key_bias                                       # mask padded key cols
        s = s - jnp.max(s, axis=-1, keepdims=True)
        e = jnp.exp(s)
        p = e * pl.reciprocal(jnp.sum(e, axis=-1, keepdims=True), approx=True)
        heads.append(jnp.einsum('bqk,bkd->bqd', p.astype(bf16), v[:, :, sl],
                                preferred_element_type=f32))       # (BB, Sp, dh)
    attn = jnp.concatenate(heads, axis=-1).reshape(M, E).astype(bf16)
    x = x + jnp.dot(attn, wo_ref[0], preferred_element_type=f32) + bo_ref[0]

    # --- MLP block:  x = x + MLP(LN2(x)) ---
    h2 = _layer_norm(x, ln2g_ref[0], ln2b_ref[0]).astype(bf16)
    m = jnp.dot(h2, w1_ref[0], preferred_element_type=f32) + b1_ref[0]
    m = 0.5 * m * (1.0 + jax.lax.erf(m * (1.0 / math.sqrt(2.0))))  # exact GELU (f32)
    x = x + jnp.dot(m.astype(bf16), w2_ref[0], preferred_element_type=f32) + b2_ref[0]

    x_ref[...] = x                                                 # carry to next layer

    # ---- last layer: final LayerNorm on the CLS row of every image in the block ----
    @pl.when(l == pl.num_programs(1) - 1)
    def _():
        cls = x.reshape(BB, Sp, E)[:, 0, :]                        # (BB, E)
        out = _layer_norm(cls, normg_ref[...], normb_ref[...])
        o_ref[...] = out.reshape(1, BB, E)


# ------------------------------- wrapper -------------------------------------

def vision_encoder_forward(x, kp, *, patch_size, num_heads, batch_block=None):
    """x: (B, C, H, W) NCHW image batch.  kp: kernel-layout params (see prepare)."""
    B, C, H, W = x.shape
    p = patch_size
    Hp, Wp = H // p, W // p
    N = Hp * Wp
    P = C * p * p
    S = N + 1
    Sp = ((S + 7) // 8) * 8                    # pad seq to a multiple of 8 sublanes
    E = kp["proj_w"].shape[1]
    L = kp["wq"].shape[0]

    BB = batch_block if batch_block is not None else min(B, max(1, 256 // Sp))
    assert B % BB == 0, (B, BB)
    nb = B // BB

    # NCHW -> pre-flattened per-patch rows (nb, BB*N, P); channel-major (c, i, j) within
    # a patch to match Conv2d weight.reshape(E, C*p*p).  Pure layout work, kept in XLA.
    patches = (x.reshape(B, C, Hp, p, Wp, p)
                .transpose(0, 2, 4, 1, 3, 5)
                .reshape(nb, BB * N, P)
                .astype(jnp.bfloat16))

    inputs = [patches,
              kp["proj_w"], kp["proj_b"], kp["cls_pos"], kp["pos_patch"],
              kp["ln1_g"], kp["ln1_b"], kp["wq"], kp["wk"], kp["wv"],
              kp["bq"], kp["bk"], kp["bv"], kp["wo"], kp["bo"],
              kp["ln2_g"], kp["ln2_b"], kp["w1"], kp["b1"], kp["w2"], kp["b2"],
              kp["norm_g"], kp["norm_b"]]

    def fixed(a):      # resident for the whole call (same block every step)
        return pl.BlockSpec(a.shape, lambda b, l: (0,) * a.ndim)

    def layered(a):    # stacked on L; stream one layer's slice per layer step
        return pl.BlockSpec((1,) + a.shape[1:],
                            lambda b, l: (l,) + (0,) * (a.ndim - 1))

    in_specs = ([pl.BlockSpec((1, BB * N, P), lambda b, l: (b, 0, 0))]
                + [fixed(a) for a in inputs[1:5]]
                + [layered(a) for a in inputs[5:21]]
                + [fixed(a) for a in inputs[21:]])

    # VMEM limit sized from actual per-step residency (double-buffered weights + scratch).
    per_layer = ["ln1_g", "ln1_b", "wq", "wk", "wv", "bq", "bk", "bv", "wo", "bo",
                 "ln2_g", "ln2_b", "w1", "b1", "w2", "b2"]
    always = ["proj_w", "proj_b", "cls_pos", "pos_patch", "norm_g", "norm_b"]
    step_bytes = sum(kp[n].size * kp[n].dtype.itemsize // L for n in per_layer)
    step_bytes += sum(kp[n].size * kp[n].dtype.itemsize for n in always)
    step_bytes += BB * N * P * 2 + BB * Sp * E * 4 + BB * E * 4
    vmem_limit = int(min(64 * 1024 * 1024, max(32 * 1024 * 1024, 4 * step_bytes)))

    out = pl.pallas_call(
        partial(vit_fwd_kernel, num_heads=num_heads, num_patches=N,
                seq_len=S, seq_pad=Sp, batch_block=BB),
        out_shape=jax.ShapeDtypeStruct((nb, BB, E), jnp.float32),
        grid_spec=pltpu.PrefetchScalarGridSpec(
            num_scalar_prefetch=0,
            grid=(nb, L),
            in_specs=in_specs,
            out_specs=pl.BlockSpec((1, BB, E), lambda b, l: (b, 0, 0)),
            scratch_shapes=[pltpu.VMEM((BB * Sp, E), jnp.float32)]),
        compiler_params=pltpu.CompilerParams(
            dimension_semantics=("parallel", "arbitrary"),
            vmem_limit_bytes=vmem_limit),
    )(*inputs)
    return out.reshape(B, E)


# ------------------------- parameters (torch layout) --------------------------

def init_torch_style_params(key, *, img_size, patch_size, in_channels, embed_dim,
                            num_layers, mlp_ratio):
    """Parameters in the shapes PyTorch's VisionEncoder would hold.
    (cls_token / pos_embedding are given small random values instead of torch's zero
    init so the positional / CLS plumbing is actually exercised numerically.)"""
    num_patches = (img_size // patch_size) ** 2
    hidden = int(embed_dim * mlp_ratio)

    def nrm(k, shape):
        return 0.02 * jax.random.normal(k, shape, jnp.float32)

    keys = jax.random.split(key, 4 + 6 * num_layers)
    params = {
        "conv_w": nrm(keys[0], (embed_dim, in_channels, patch_size, patch_size)),
        "conv_b": nrm(keys[1], (embed_dim,)),
        "cls_token": nrm(keys[2], (1, 1, embed_dim)),
        "pos_embedding": nrm(keys[3], (1, num_patches + 1, embed_dim)),
        "norm_w": jnp.ones((embed_dim,), jnp.float32),
        "norm_b": jnp.zeros((embed_dim,), jnp.float32),
        "layers": [],
    }
    for i in range(num_layers):
        k0, k1, k2, k3, k4, k5 = keys[4 + 6 * i: 10 + 6 * i]
        params["layers"].append({
            "ln1_w": jnp.ones((embed_dim,), jnp.float32),
            "ln1_b": jnp.zeros((embed_dim,), jnp.float32),
            "in_proj_w": nrm(k0, (3 * embed_dim, embed_dim)),
            "in_proj_b": nrm(k1, (3 * embed_dim,)),
            "out_proj_w": nrm(k2, (embed_dim, embed_dim)),
            "out_proj_b": nrm(k3, (embed_dim,)),
            "ln2_w": jnp.ones((embed_dim,), jnp.float32),
            "ln2_b": jnp.zeros((embed_dim,), jnp.float32),
            "fc1_w": nrm(k4, (hidden, embed_dim)),
            "fc1_b": jnp.zeros((hidden,), jnp.float32),
            "fc2_w": nrm(k5, (embed_dim, hidden)),
            "fc2_b": jnp.zeros((embed_dim,), jnp.float32),
        })
    return params


def prepare_kernel_params(tp, num_heads):
    """Pre-transpose weights to (in, out), stack layers on a leading L axis for
    streaming, and pre-cast matmul weights to bf16 (biases / LN params stay f32)."""
    E = tp["cls_token"].shape[-1]
    layers = tp["layers"]
    bf = jnp.bfloat16

    def stack(fn):
        return jnp.stack([fn(lp) for lp in layers], axis=0)

    return {
        "proj_w": tp["conv_w"].reshape(E, -1).T.astype(bf),          # (P, E)
        "proj_b": tp["conv_b"].reshape(1, E),
        "cls_pos": tp["cls_token"].reshape(1, E) + tp["pos_embedding"][:, 0, :],
        "pos_patch": tp["pos_embedding"][0, 1:, :],                   # (N, E)
        "norm_g": tp["norm_w"].reshape(1, E),
        "norm_b": tp["norm_b"].reshape(1, E),
        "ln1_g": stack(lambda lp: lp["ln1_w"].reshape(1, E)),
        "ln1_b": stack(lambda lp: lp["ln1_b"].reshape(1, E)),
        "wq": stack(lambda lp: lp["in_proj_w"][0:E].T).astype(bf),    # (L, E, E)
        "wk": stack(lambda lp: lp["in_proj_w"][E:2 * E].T).astype(bf),
        "wv": stack(lambda lp: lp["in_proj_w"][2 * E:].T).astype(bf),
        "bq": stack(lambda lp: lp["in_proj_b"][0:E].reshape(1, E)),
        "bk": stack(lambda lp: lp["in_proj_b"][E:2 * E].reshape(1, E)),
        "bv": stack(lambda lp: lp["in_proj_b"][2 * E:].reshape(1, E)),
        "wo": stack(lambda lp: lp["out_proj_w"].T).astype(bf),        # (L, E, E)
        "bo": stack(lambda lp: lp["out_proj_b"].reshape(1, E)),
        "ln2_g": stack(lambda lp: lp["ln2_w"].reshape(1, E)),
        "ln2_b": stack(lambda lp: lp["ln2_b"].reshape(1, E)),
        "w1": stack(lambda lp: lp["fc1_w"].T).astype(bf),             # (L, E, H)
        "b1": stack(lambda lp: lp["fc1_b"].reshape(1, -1)),
        "w2": stack(lambda lp: lp["fc2_w"].T).astype(bf),             # (L, H, E)
        "b2": stack(lambda lp: lp["fc2_b"].reshape(1, E)),
    }


# --------------------- pure-JAX reference (same bf16 policy) -------------------

def reference_forward(x, tp, *, patch_size, num_heads):
    B, C, H, W = x.shape
    p = patch_size
    Hp, Wp = H // p, W // p
    N = Hp * Wp
    E = tp["cls_token"].shape[-1]
    dh = E // num_heads
    bf, f32 = jnp.bfloat16, jnp.float32

    def ln(z, g, b, eps=1e-5):
        mu = z.mean(-1, keepdims=True)
        zc = z - mu
        var = (zc * zc).mean(-1, keepdims=True)
        return zc * jax.lax.rsqrt(var + eps) * g + b

    patches = (x.reshape(B, C, Hp, p, Wp, p)
                .transpose(0, 2, 4, 1, 3, 5).reshape(B, N, C * p * p)).astype(bf)
    w = tp["conv_w"].reshape(E, -1).astype(bf)
    tok = jnp.einsum('bnp,ep->bne', patches, w, preferred_element_type=f32) + tp["conv_b"]
    cls = jnp.broadcast_to(tp["cls_token"], (B, 1, E))
    xx = jnp.concatenate([cls, tok], axis=1) + tp["pos_embedding"]

    for lp in tp["layers"]:
        h = ln(xx, lp["ln1_w"], lp["ln1_b"]).astype(bf)
        q = jnp.einsum('bse,oe->bso', h, lp["in_proj_w"][0:E].astype(bf),
                       preferred_element_type=f32) + lp["in_proj_b"][0:E]
        k = jnp.einsum('bse,oe->bso', h, lp["in_proj_w"][E:2 * E].astype(bf),
                       preferred_element_type=f32) + lp["in_proj_b"][E:2 * E]
        v = jnp.einsum('bse,oe->bso', h, lp["in_proj_w"][2 * E:].astype(bf),
                       preferred_element_type=f32) + lp["in_proj_b"][2 * E:]
        q = q.reshape(B, -1, num_heads, dh)
        k = k.reshape(B, -1, num_heads, dh)
        v = v.reshape(B, -1, num_heads, dh)
        s = jnp.einsum('bqhd,bkhd->bhqk', q.astype(bf), k.astype(bf),
                       preferred_element_type=f32) * (1.0 / math.sqrt(dh))
        pattn = jax.nn.softmax(s, axis=-1)
        o = jnp.einsum('bhqk,bkhd->bqhd', pattn.astype(bf), v.astype(bf),
                       preferred_element_type=f32).reshape(B, -1, E)
        o = jnp.einsum('bse,oe->bso', o.astype(bf), lp["out_proj_w"].astype(bf),
                       preferred_element_type=f32) + lp["out_proj_b"]
        xx = xx + o
        h2 = ln(xx, lp["ln2_w"], lp["ln2_b"]).astype(bf)
        m = jnp.einsum('bse,he->bsh', h2, lp["fc1_w"].astype(bf),
                       preferred_element_type=f32) + lp["fc1_b"]
        m = 0.5 * m * (1.0 + jax.lax.erf(m * (1.0 / math.sqrt(2.0))))
        m = jnp.einsum('bsh,eh->bse', m.astype(bf), lp["fc2_w"].astype(bf),
                       preferred_element_type=f32) + lp["fc2_b"]
        xx = xx + m

    xx = ln(xx, tp["norm_w"], tp["norm_b"])
    return xx[:, 0]


# ----------------------------------- main ------------------------------------

if __name__ == "__main__":
    # VisionEncoder(img_size, patch_size, in_channels, num_classes, embed_dim,
    #               num_heads, num_layers, mlp_dim, dropout)
    # VisionEncoder passes `mlp_dim` into TransformerEncoder's mlp_ratio slot, so the
    # MLP hidden width = int(embed_dim * mlp_dim).  Dropout is identity in eval mode.
    img_size, patch_size, in_channels = 16, 4, 3
    embed_dim, num_heads, num_layers = 32, 2, 2
    mlp_dim, dropout = 2.0, 0.1
    B = 4                      # 2 batch blocks of 2 images -> exercises the parallel axis

    key = jax.random.PRNGKey(0)
    k_params, k_x = jax.random.split(key)
    tparams = init_torch_style_params(
        k_params, img_size=img_size, patch_size=patch_size,
        in_channels=in_channels, embed_dim=embed_dim,
        num_layers=num_layers, mlp_ratio=mlp_dim)
    kparams = prepare_kernel_params(tparams, num_heads)

    x = jax.random.normal(k_x, (B, in_channels, img_size, img_size), jnp.float32)

    fwd = jax.jit(partial(vision_encoder_forward, patch_size=patch_size,
                          num_heads=num_heads, batch_block=2))
    out = jax.block_until_ready(fwd(x, kparams))

    ref = reference_forward(x, tparams, patch_size=patch_size, num_heads=num_heads)

    assert out.shape == (B, embed_dim), out.shape
    assert bool(jnp.all(jnp.isfinite(out)))
    err = float(jnp.max(jnp.abs(out - ref)))
    assert err < 5e-2, f"max abs diff vs reference: {err}"
    print("KERNEL_OK")
</pallas_src>

<mosaic_0001>
module attributes {stable_mosaic.version = 11 : i64} {
  func.func @vit_fwd_kernel(%arg0: i32, %arg1: i32, %arg2: memref<1x32x48xbf16, #tpu.memory_space<vmem>>, %arg3: memref<48x32xbf16, #tpu.memory_space<vmem>>, %arg4: memref<1x32xf32, #tpu.memory_space<vmem>>, %arg5: memref<1x32xf32, #tpu.memory_space<vmem>>, %arg6: memref<16x32xf32, #tpu.memory_space<vmem>>, %arg7: memref<1x1x32xf32, #tpu.memory_space<vmem>>, %arg8: memref<1x1x32xf32, #tpu.memory_space<vmem>>, %arg9: memref<1x32x32xbf16, #tpu.memory_space<vmem>>, %arg10: memref<1x32x32xbf16, #tpu.memory_space<vmem>>, %arg11: memref<1x32x32xbf16, #tpu.memory_space<vmem>>, %arg12: memref<1x1x32xf32, #tpu.memory_space<vmem>>, %arg13: memref<1x1x32xf32, #tpu.memory_space<vmem>>, %arg14: memref<1x1x32xf32, #tpu.memory_space<vmem>>, %arg15: memref<1x32x32xbf16, #tpu.memory_space<vmem>>, %arg16: memref<1x1x32xf32, #tpu.memory_space<vmem>>, %arg17: memref<1x1x32xf32, #tpu.memory_space<vmem>>, %arg18: memref<1x1x32xf32, #tpu.memory_space<vmem>>, %arg19: memref<1x32x64xbf16, #tpu.memory_space<vmem>>, %arg20: memref<1x1x64xf32, #tpu.memory_space<vmem>>, %arg21: memref<1x64x32xbf16, #tpu.memory_space<vmem>>, %arg22: memref<1x1x32xf32, #tpu.memory_space<vmem>>, %arg23: memref<1x32xf32, #tpu.memory_space<vmem>>, %arg24: memref<1x32xf32, #tpu.memory_space<vmem>>, %arg25: memref<1x2x32xf32, #tpu.memory_space<vmem>>, %arg26: memref<48x32xf32, #tpu.memory_space<vmem>>) attributes {dimension_semantics = [#tpu.dimension_semantics<parallel>, #tpu.dimension_semantics<arbitrary>], iteration_bounds = array<i64: 2, 2>, scalar_prefetch = 0 : i64, scratch_operands = 1 : i64, tpu.core_type = #tpu.core_type<tc>, window_params = [{transform_indices = @transform_0, window_bounds = array<i64: 1, 32, 48>}, {pipeline_mode = #tpu.pipeline_mode<synchronous>, transform_indices = @transform_1, window_bounds = array<i64: 48, 32>}, {pipeline_mode = #tpu.pipeline_mode<synchronous>, transform_indices = @transform_2, window_bounds = array<i64: 1, 32>}, {pipeline_mode = #tpu.pipeline_mode<synchronous>, transform_indices = @transform_3, window_bounds = array<i64: 1, 32>}, {pipeline_mode = #tpu.pipeline_mode<synchronous>, transform_indices = @transform_4, window_bounds = array<i64: 16, 32>}, {transform_indices = @transform_5, window_bounds = array<i64: 1, 1, 32>}, {transform_indices = @transform_6, window_bounds = array<i64: 1, 1, 32>}, {transform_indices = @transform_7, window_bounds = array<i64: 1, 32, 32>}, {transform_indices = @transform_8, window_bounds = array<i64: 1, 32, 32>}, {transform_indices = @transform_9, window_bounds = array<i64: 1, 32, 32>}, {transform_indices = @transform_10, window_bounds = array<i64: 1, 1, 32>}, {transform_indices = @transform_11, window_bounds = array<i64: 1, 1, 32>}, {transform_indices = @transform_12, window_bounds = array<i64: 1, 1, 32>}, {transform_indices = @transform_13, window_bounds = array<i64: 1, 32, 32>}, {transform_indices = @transform_14, window_bounds = array<i64: 1, 1, 32>}, {transform_indices = @transform_15, window_bounds = array<i64: 1, 1, 32>}, {transform_indices = @transform_16, window_bounds = array<i64: 1, 1, 32>}, {transform_indices = @transform_17, window_bounds = array<i64: 1, 32, 64>}, {transform_indices = @transform_18, window_bounds = array<i64: 1, 1, 64>}, {transform_indices = @transform_19, window_bounds = array<i64: 1, 64, 32>}, {transform_indices = @transform_20, window_bounds = array<i64: 1, 1, 32>}, {pipeline_mode = #tpu.pipeline_mode<synchronous>, transform_indices = @transform_21, window_bounds = array<i64: 1, 32>}, {pipeline_mode = #tpu.pipeline_mode<synchronous>, transform_indices = @transform_22, window_bounds = array<i64: 1, 32>}, {transform_indices = @transform_23, window_bounds = array<i64: 1, 2, 32>}]} {
    %c0_i32 = arith.constant 0 : i32
    %0 = arith.cmpi eq, %arg1, %c0_i32 : i32
    %1 = arith.extui %0 : i1 to i32
    %c0_i32_0 = arith.constant 0 : i32
    %2 = arith.cmpi ne, %1, %c0_i32_0 : i32
    scf.if %2 {
      %c0_83 = arith.constant 0 : index
      %c0_84 = arith.constant 0 : index
      %c0_85 = arith.constant 0 : index
      %166 = vector.load %arg2[%c0_83, %c0_84, %c0_85] : memref<1x32x48xbf16, #tpu.memory_space<vmem>>, vector<1x32x48xbf16>
      %167 = vector.shape_cast %166 : vector<1x32x48xbf16> to vector<32x48xbf16>
      %c0_86 = arith.constant 0 : index
      %c0_87 = arith.constant 0 : index
      %168 = vector.load %arg3[%c0_86, %c0_87] : memref<48x32xbf16, #tpu.memory_space<vmem>>, vector<48x32xbf16>
      %cst_88 = arith.constant dense<0.000000e+00> : vector<32x32xf32>
      %169 = tpu.matmul %167, %168, %cst_88 {dimension_numbers = #tpu.dot_dimension_numbers<[1], [0], [0], [1], [0, 0, 1, 1], [], []>} : vector<32x48xbf16>, vector<48x32xbf16>, vector<32x32xf32> -> vector<32x32xf32>
      %170 = vector.shape_cast %169 : vector<32x32xf32> to vector<2x16x32xf32>
      %c0_89 = arith.constant 0 : index
      %c0_90 = arith.constant 0 : index
      %171 = vector.load %arg4[%c0_89, %c0_90] : memref<1x32xf32, #tpu.memory_space<vmem>>, vector<1x32xf32>
      %172 = vector.shape_cast %171 : vector<1x32xf32> to vector<1x1x32xf32>
      %173 = vector.broadcast %172 : vector<1x1x32xf32> to vector<2x16x32xf32>
      %174 = arith.addf %170, %173 : vector<2x16x32xf32>
      %c0_91 = arith.constant 0 : index
      %c0_92 = arith.constant 0 : index
      %175 = vector.load %arg6[%c0_91, %c0_92] : memref<16x32xf32, #tpu.memory_space<vmem>>, vector<16x32xf32>
      %176 = vector.shape_cast %175 : vector<16x32xf32> to vector<1x16x32xf32>
      %177 = vector.broadcast %176 : vector<1x16x32xf32> to vector<2x16x32xf32>
      %178 = arith.addf %174, %177 : vector<2x16x32xf32>
      %c0_93 = arith.constant 0 : index
      %c0_94 = arith.constant 0 : index
      %179 = vector.load %arg5[%c0_93, %c0_94] : memref<1x32xf32, #tpu.memory_space<vmem>>, vector<1x32xf32>
      %180 = vector.shape_cast %179 : vector<1x32xf32> to vector<1x1x32xf32>
      %181 = vector.shape_cast %180 : vector<1x1x32xf32> to vector<1x1x32xf32>
      %182 = vector.broadcast %181 : vector<1x1x32xf32> to vector<2x1x32xf32>
      %cst_95 = arith.constant 0.000000e+00 : f32
      %183 = vector.broadcast %cst_95 : f32 to vector<2x7x32xf32>
      %184 = tpu.concatenate %182, %178, %183 in 1 : vector<2x1x32xf32>, vector<2x16x32xf32>, vector<2x7x32xf32> -> vector<2x24x32xf32>
      %185 = vector.shape_cast %184 : vector<2x24x32xf32> to vector<48x32xf32>
      %c0_96 = arith.constant 0 : index
      %c0_97 = arith.constant 0 : index
      %186 = vector.load %arg26[%c0_96, %c0_97] : memref<48x32xf32, #tpu.memory_space<vmem>>, vector<48x32xf32>
      tpu.vector_store %arg26[%c0_96, %c0_97], %185 {strides = array<i32>} : memref<48x32xf32, #tpu.memory_space<vmem>>, vector<48x32xf32>,
    } else {
    }
    %3 = tpu.iota {dimensions = array<i32: 2>} : vector<1x1x24xi32>
    %c17_i32 = arith.constant 17 : i32
    %4 = vector.broadcast %c17_i32 : i32 to vector<1x1x24xi32>
    %5 = arith.cmpi slt, %3, %4 : vector<1x1x24xi32>
    %cst = arith.constant 0.000000e+00 : f32
    %cst_1 = arith.constant -1.000000e+30 : f32
    %6 = vector.broadcast %cst : f32 to vector<1x1x24xf32>
    %7 = vector.broadcast %cst_1 : f32 to vector<1x1x24xf32>
    %8 = arith.select %5, %6, %7 : vector<1x1x24xi1>, vector<1x1x24xf32>
    %c0 = arith.constant 0 : index
    %c0_2 = arith.constant 0 : index
    %9 = vector.load %arg26[%c0, %c0_2] : memref<48x32xf32, #tpu.memory_space<vmem>>, vector<48x32xf32>
    %c0_3 = arith.constant 0 : index
    %c0_4 = arith.constant 0 : index
    %c0_5 = arith.constant 0 : index
    %10 = vector.load %arg7[%c0_3, %c0_4, %c0_5] : memref<1x1x32xf32, #tpu.memory_space<vmem>>, vector<1x1x32xf32>
    %11 = vector.shape_cast %10 : vector<1x1x32xf32> to vector<1x32xf32>
    %c0_6 = arith.constant 0 : index
    %c0_7 = arith.constant 0 : index
    %c0_8 = arith.constant 0 : index
    %12 = vector.load %arg8[%c0_6, %c0_7, %c0_8] : memref<1x1x32xf32, #tpu.memory_space<vmem>>, vector<1x1x32xf32>
    %13 = vector.shape_cast %12 : vector<1x1x32xf32> to vector<1x32xf32>
    %cst_9 = arith.constant dense<0.000000e+00> : vector<48xf32>
    %14 = vector.multi_reduction <add>, %9, %cst_9 [1] : vector<48x32xf32> to vector<48xf32>
    %15 = vector.shape_cast %14 : vector<48xf32> to vector<48x1xf32>
    %cst_10 = arith.constant 3.200000e+01 : f32
    %16 = vector.broadcast %cst_10 : f32 to vector<48x1xf32>
    %17 = arith.divf %15, %16 : vector<48x1xf32>
    %18 = vector.broadcast %17 : vector<48x1xf32> to vector<48x32xf32>
    %19 = arith.subf %9, %18 : vector<48x32xf32>
    %20 = arith.mulf %19, %19 : vector<48x32xf32>
    %cst_11 = arith.constant dense<0.000000e+00> : vector<48xf32>
    %21 = vector.multi_reduction <add>, %20, %cst_11 [1] : vector<48x32xf32> to vector<48xf32>
    %22 = vector.shape_cast %21 : vector<48xf32> to vector<48x1xf32>
    %cst_12 = arith.constant 3.200000e+01 : f32
    %23 = vector.broadcast %cst_12 : f32 to vector<48x1xf32>
    %24 = arith.divf %22, %23 : vector<48x1xf32>
    %cst_13 = arith.constant 9.99999974E-6 : f32
    %25 = vector.broadcast %cst_13 : f32 to vector<48x1xf32>
    %26 = arith.addf %24, %25 : vector<48x1xf32>
    %27 = math.rsqrt %26 : vector<48x1xf32>
    %28 = vector.broadcast %27 : vector<48x1xf32> to vector<48x32xf32>
    %29 = arith.mulf %19, %28 : vector<48x32xf32>
    %30 = vector.broadcast %11 : vector<1x32xf32> to vector<48x32xf32>
    %31 = arith.mulf %29, %30 : vector<48x32xf32>
    %32 = vector.broadcast %13 : vector<1x32xf32> to vector<48x32xf32>
    %33 = arith.addf %31, %32 : vector<48x32xf32>
    %34 = arith.truncf %33 : vector<48x32xf32> to vector<48x32xbf16>
    %c0_14 = arith.constant 0 : index
    %c0_15 = arith.constant 0 : index
    %c0_16 = arith.constant 0 : index
    %35 = vector.load %arg9[%c0_14, %c0_15, %c0_16] : memref<1x32x32xbf16, #tpu.memory_space<vmem>>, vector<1x32x32xbf16>
    %36 = vector.shape_cast %35 : vector<1x32x32xbf16> to vector<32x32xbf16>
    %cst_17 = arith.constant dense<0.000000e+00> : vector<48x32xf32>
    %37 = tpu.matmul %34, %36, %cst_17 {dimension_numbers = #tpu.dot_dimension_numbers<[1], [0], [0], [1], [0, 0, 1, 1], [], []>} : vector<48x32xbf16>, vector<32x32xbf16>, vector<48x32xf32> -> vector<48x32xf32>
    %c0_18 = arith.constant 0 : index
    %c0_19 = arith.constant 0 : index
    %c0_20 = arith.constant 0 : index
    %38 = vector.load %arg12[%c0_18, %c0_19, %c0_20] : memref<1x1x32xf32, #tpu.memory_space<vmem>>, vector<1x1x32xf32>
    %39 = vector.shape_cast %38 : vector<1x1x32xf32> to vector<1x32xf32>
    %40 = vector.broadcast %39 : vector<1x32xf32> to vector<48x32xf32>
    %41 = arith.addf %37, %40 : vector<48x32xf32>
    %c0_21 = arith.constant 0 : index
    %c0_22 = arith.constant 0 : index
    %c0_23 = arith.constant 0 : index
    %42 = vector.load %arg10[%c0_21, %c0_22, %c0_23] : memref<1x32x32xbf16, #tpu.memory_space<vmem>>, vector<1x32x32xbf16>
    %43 = vector.shape_cast %42 : vector<1x32x32xbf16> to vector<32x32xbf16>
    %cst_24 = arith.constant dense<0.000000e+00> : vector<48x32xf32>
    %44 = tpu.matmul %34, %43, %cst_24 {dimension_numbers = #tpu.dot_dimension_numbers<[1], [0], [0], [1], [0, 0, 1, 1], [], []>} : vector<48x32xbf16>, vector<32x32xbf16>, vector<48x32xf32> -> vector<48x32xf32>
    %c0_25 = arith.constant 0 : index
    %c0_26 = arith.constant 0 : index
    %c0_27 = arith.constant 0 : index
    %45 = vector.load %arg13[%c0_25, %c0_26, %c0_27] : memref<1x1x32xf32, #tpu.memory_space<vmem>>, vector<1x1x32xf32>
    %46 = vector.shape_cast %45 : vector<1x1x32xf32> to vector<1x32xf32>
    %47 = vector.broadcast %46 : vector<1x32xf32> to vector<48x32xf32>
    %48 = arith.addf %44, %47 : vector<48x32xf32>
    %c0_28 = arith.constant 0 : index
    %c0_29 = arith.constant 0 : index
    %c0_30 = arith.constant 0 : index
    %49 = vector.load %arg11[%c0_28, %c0_29, %c0_30] : memref<1x32x32xbf16, #tpu.memory_space<vmem>>, vector<1x32x32xbf16>
    %50 = vector.shape_cast %49 : vector<1x32x32xbf16> to vector<32x32xbf16>
    %cst_31 = arith.constant dense<0.000000e+00> : vector<48x32xf32>
    %51 = tpu.matmul %34, %50, %cst_31 {dimension_numbers = #tpu.dot_dimension_numbers<[1], [0], [0], [1], [0, 0, 1, 1], [], []>} : vector<48x32xbf16>, vector<32x32xbf16>, vector<48x32xf32> -> vector<48x32xf32>
    %c0_32 = arith.constant 0 : index
    %c0_33 = arith.constant 0 : index
    %c0_34 = arith.constant 0 : index
    %52 = vector.load %arg14[%c0_32, %c0_33, %c0_34] : memref<1x1x32xf32, #tpu.memory_space<vmem>>, vector<1x1x32xf32>
    %53 = vector.shape_cast %52 : vector<1x1x32xf32> to vector<1x32xf32>
    %54 = vector.broadcast %53 : vector<1x32xf32> to vector<48x32xf32>
    %55 = arith.addf %51, %54 : vector<48x32xf32>
    %56 = vector.shape_cast %41 : vector<48x32xf32> to vector<2x24x32xf32>
    %57 = arith.truncf %56 : vector<2x24x32xf32> to vector<2x24x32xbf16>
    %58 = vector.shape_cast %48 : vector<48x32xf32> to vector<2x24x32xf32>
    %59 = arith.truncf %58 : vector<2x24x32xf32> to vector<2x24x32xbf16>
    %60 = vector.shape_cast %55 : vector<48x32xf32> to vector<2x24x32xf32>
    %61 = arith.truncf %60 : vector<2x24x32xf32> to vector<2x24x32xbf16>
    %62 = vector.extract_strided_slice %57 {offsets = [0, 0, 0], sizes = [2, 24, 16], strides = [1, 1, 1]} : vector<2x24x32xbf16> to vector<2x24x16xbf16>
    %63 = vector.extract_strided_slice %59 {offsets = [0, 0, 0], sizes = [2, 24, 16], strides = [1, 1, 1]} : vector<2x24x32xbf16> to vector<2x24x16xbf16>
    "tpu.trace_start"() <{level = 10 : i32, message = "bqd,bkd->bqk"}> : () -> ()
    %cst_35 = arith.constant dense<0.000000e+00> : vector<2x24x24xf32>
    %64 = tpu.matmul %62, %63, %cst_35 {dimension_numbers = #tpu.dot_dimension_numbers<[2], [2], [1], [1], [0, 0, 0, 1, 1, 1], [0], [0]>} : vector<2x24x16xbf16>, vector<2x24x16xbf16>, vector<2x24x24xf32> -> vector<2x24x24xf32>
    "tpu.trace_stop"() : () -> ()
    %cst_36 = arith.constant 2.500000e-01 : f32
    %65 = vector.broadcast %cst_36 : f32 to vector<2x24x24xf32>
    %66 = arith.mulf %64, %65 : vector<2x24x24xf32>
    %67 = vector.broadcast %8 : vector<1x1x24xf32> to vector<2x24x24xf32>
    %68 = arith.addf %66, %67 : vector<2x24x24xf32>
    %cst_37 = arith.constant dense<0xFF800000> : vector<2x24xf32>
    %69 = vector.multi_reduction <maximumf>, %68, %cst_37 [2] : vector<2x24x24xf32> to vector<2x24xf32>
    %70 = vector.shape_cast %69 : vector<2x24xf32> to vector<2x24x1xf32>
    %71 = vector.broadcast %70 : vector<2x24x1xf32> to vector<2x24x24xf32>
    %72 = arith.subf %68, %71 : vector<2x24x24xf32>
    %73 = math.exp %72 : vector<2x24x24xf32>
    %cst_38 = arith.constant dense<0.000000e+00> : vector<2x24xf32>
    %74 = vector.multi_reduction <add>, %73, %cst_38 [2] : vector<2x24x24xf32> to vector<2x24xf32>
    %75 = vector.shape_cast %74 : vector<2x24xf32> to vector<2x24x1xf32>
    %76 = tpu.reciprocal %75 {approx = true} : vector<2x24x1xf32> -> vector<2x24x1xf32>
    %77 = vector.broadcast %76 : vector<2x24x1xf32> to vector<2x24x24xf32>
    %78 = arith.mulf %73, %77 : vector<2x24x24xf32>
    %79 = arith.truncf %78 : vector<2x24x24xf32> to vector<2x24x24xbf16>
    %80 = vector.extract_strided_slice %61 {offsets = [0, 0, 0], sizes = [2, 24, 16], strides = [1, 1, 1]} : vector<2x24x32xbf16> to vector<2x24x16xbf16>
    "tpu.trace_start"() <{level = 10 : i32, message = "bqk,bkd->bqd"}> : () -> ()
    %cst_39 = arith.constant dense<0.000000e+00> : vector<2x24x16xf32>
    %81 = tpu.matmul %79, %80, %cst_39 {dimension_numbers = #tpu.dot_dimension_numbers<[2], [1], [1], [2], [0, 0, 0, 1, 1, 2], [0], [0]>} : vector<2x24x24xbf16>, vector<2x24x16xbf16>, vector<2x24x16xf32> -> vector<2x24x16xf32>
    "tpu.trace_stop"() : () -> ()
    %82 = vector.extract_strided_slice %57 {offsets = [0, 0, 16], sizes = [2, 24, 16], strides = [1, 1, 1]} : vector<2x24x32xbf16> to vector<2x24x16xbf16>
    %83 = vector.extract_strided_slice %59 {offsets = [0, 0, 16], sizes = [2, 24, 16], strides = [1, 1, 1]} : vector<2x24x32xbf16> to vector<2x24x16xbf16>
    "tpu.trace_start"() <{level = 10 : i32, message = "bqd,bkd->bqk"}> : () -> ()
    %cst_40 = arith.constant dense<0.000000e+00> : vector<2x24x24xf32>
    %84 = tpu.matmul %82, %83, %cst_40 {dimension_numbers = #tpu.dot_dimension_numbers<[2], [2], [1], [1], [0, 0, 0, 1, 1, 1], [0], [0]>} : vector<2x24x16xbf16>, vector<2x24x16xbf16>, vector<2x24x24xf32> -> vector<2x24x24xf32>
    "tpu.trace_stop"() : () -> ()
    %cst_41 = arith.constant 2.500000e-01 : f32
    %85 = vector.broadcast %cst_41 : f32 to vector<2x24x24xf32>
    %86 = arith.mulf %84, %85 : vector<2x24x24xf32>
    %87 = vector.broadcast %8 : vector<1x1x24xf32> to vector<2x24x24xf32>
    %88 = arith.addf %86, %87 : vector<2x24x24xf32>
    %cst_42 = arith.constant dense<0xFF800000> : vector<2x24xf32>
    %89 = vector.multi_reduction <maximumf>, %88, %cst_42 [2] : vector<2x24x24xf32> to vector<2x24xf32>
    %90 = vector.shape_cast %89 : vector<2x24xf32> to vector<2x24x1xf32>
    %91 = vector.broadcast %90 : vector<2x24x1xf32> to vector<2x24x24xf32>
    %92 = arith.subf %88, %91 : vector<2x24x24xf32>
    %93 = math.exp %92 : vector<2x24x24xf32>
    %cst_43 = arith.constant dense<0.000000e+00> : vector<2x24xf32>
    %94 = vector.multi_reduction <add>, %93, %cst_43 [2] : vector<2x24x24xf32> to vector<2x24xf32>
    %95 = vector.shape_cast %94 : vector<2x24xf32> to vector<2x24x1xf32>
    %96 = tpu.reciprocal %95 {approx = true} : vector<2x24x1xf32> -> vector<2x24x1xf32>
    %97 = vector.broadcast %96 : vector<2x24x1xf32> to vector<2x24x24xf32>
    %98 = arith.mulf %93, %97 : vector<2x24x24xf32>
    %99 = arith.truncf %98 : vector<2x24x24xf32> to vector<2x24x24xbf16>
    %100 = vector.extract_strided_slice %61 {offsets = [0, 0, 16], sizes = [2, 24, 16], strides = [1, 1, 1]} : vector<2x24x32xbf16> to vector<2x24x16xbf16>
    "tpu.trace_start"() <{level = 10 : i32, message = "bqk,bkd->bqd"}> : () -> ()
    %cst_44 = arith.constant dense<0.000000e+00> : vector<2x24x16xf32>
    %101 = tpu.matmul %99, %100, %cst_44 {dimension_numbers = #tpu.dot_dimension_numbers<[2], [1], [1], [2], [0, 0, 0, 1, 1, 2], [0], [0]>} : vector<2x24x24xbf16>, vector<2x24x16xbf16>, vector<2x24x16xf32> -> vector<2x24x16xf32>
    "tpu.trace_stop"() : () -> ()
    %102 = tpu.concatenate %81, %101 in 2 : vector<2x24x16xf32>, vector<2x24x16xf32> -> vector<2x24x32xf32>
    %103 = vector.shape_cast %102 : vector<2x24x32xf32> to vector<48x32xf32>
    %104 = arith.truncf %103 : vector<48x32xf32> to vector<48x32xbf16>
    %c0_45 = arith.constant 0 : index
    %c0_46 = arith.constant 0 : index
    %c0_47 = arith.constant 0 : index
    %105 = vector.load %arg15[%c0_45, %c0_46, %c0_47] : memref<1x32x32xbf16, #tpu.memory_space<vmem>>, vector<1x32x32xbf16>
    %106 = vector.shape_cast %105 : vector<1x32x32xbf16> to vector<32x32xbf16>
    %cst_48 = arith.constant dense<0.000000e+00> : vector<48x32xf32>
    %107 = tpu.matmul %104, %106, %cst_48 {dimension_numbers = #tpu.dot_dimension_numbers<[1], [0], [0], [1], [0, 0, 1, 1], [], []>} : vector<48x32xbf16>, vector<32x32xbf16>, vector<48x32xf32> -> vector<48x32xf32>
    %108 = arith.addf %9, %107 : vector<48x32xf32>
    %c0_49 = arith.constant 0 : index
    %c0_50 = arith.constant 0 : index
    %c0_51 = arith.constant 0 : index
    %109 = vector.load %arg16[%c0_49, %c0_50, %c0_51] : memref<1x1x32xf32, #tpu.memory_space<vmem>>, vector<1x1x32xf32>
    %110 = vector.shape_cast %109 : vector<1x1x32xf32> to vector<1x32xf32>
    %111 = vector.broadcast %110 : vector<1x32xf32> to vector<48x32xf32>
    %112 = arith.addf %108, %111 : vector<48x32xf32>
    %c0_52 = arith.constant 0 : index
    %c0_53 = arith.constant 0 : index
    %c0_54 = arith.constant 0 : index
    %113 = vector.load %arg17[%c0_52, %c0_53, %c0_54] : memref<1x1x32xf32, #tpu.memory_space<vmem>>, vector<1x1x32xf32>
    %114 = vector.shape_cast %113 : vector<1x1x32xf32> to vector<1x32xf32>
    %c0_55 = arith.constant 0 : index
    %c0_56 = arith.constant 0 : index
    %c0_57 = arith.constant 0 : index
    %115 = vector.load %arg18[%c0_55, %c0_56, %c0_57] : memref<1x1x32xf32, #tpu.memory_space<vmem>>, vector<1x1x32xf32>
    %116 = vector.shape_cast %115 : vector<1x1x32xf32> to vector<1x32xf32>
    %cst_58 = arith.constant dense<0.000000e+00> : vector<48xf32>
    %117 = vector.multi_reduction <add>, %112, %cst_58 [1] : vector<48x32xf32> to vector<48xf32>
    %118 = vector.shape_cast %117 : vector<48xf32> to vector<48x1xf32>
    %cst_59 = arith.constant 3.200000e+01 : f32
    %119 = vector.broadcast %cst_59 : f32 to vector<48x1xf32>
    %120 = arith.divf %118, %119 : vector<48x1xf32>
    %121 = vector.broadcast %120 : vector<48x1xf32> to vector<48x32xf32>
    %122 = arith.subf %112, %121 : vector<48x32xf32>
    %123 = arith.mulf %122, %122 : vector<48x32xf32>
    %cst_60 = arith.constant dense<0.000000e+00> : vector<48xf32>
    %124 = vector.multi_reduction <add>, %123, %cst_60 [1] : vector<48x32xf32> to vector<48xf32>
    %125 = vector.shape_cast %124 : vector<48xf32> to vector<48x1xf32>
    %cst_61 = arith.constant 3.200000e+01 : f32
    %126 = vector.broadcast %cst_61 : f32 to vector<48x1xf32>
    %127 = arith.divf %125, %126 : vector<48x1xf32>
    %cst_62 = arith.constant 9.99999974E-6 : f32
    %128 = vector.broadcast %cst_62 : f32 to vector<48x1xf32>
    %129 = arith.addf %127, %128 : vector<48x1xf32>
    %130 = math.rsqrt %129 : vector<48x1xf32>
    %131 = vector.broadcast %130 : vector<48x1xf32> to vector<48x32xf32>
    %132 = arith.mulf %122, %131 : vector<48x32xf32>
    %133 = vector.broadcast %114 : vector<1x32xf32> to vector<48x32xf32>
    %134 = arith.mulf %132, %133 : vector<48x32xf32>
    %135 = vector.broadcast %116 : vector<1x32xf32> to vector<48x32xf32>
    %136 = arith.addf %134, %135 : vector<48x32xf32>
    %137 = arith.truncf %136 : vector<48x32xf32> to vector<48x32xbf16>
    %c0_63 = arith.constant 0 : index
    %c0_64 = arith.constant 0 : index
    %c0_65 = arith.constant 0 : index
    %138 = vector.load %arg19[%c0_63, %c0_64, %c0_65] : memref<1x32x64xbf16, #tpu.memory_space<vmem>>, vector<1x32x64xbf16>
    %139 = vector.shape_cast %138 : vector<1x32x64xbf16> to vector<32x64xbf16>
    %cst_66 = arith.constant dense<0.000000e+00> : vector<48x64xf32>
    %140 = tpu.matmul %137, %139, %cst_66 {dimension_numbers = #tpu.dot_dimension_numbers<[1], [0], [0], [1], [0, 0, 1, 1], [], []>} : vector<48x32xbf16>, vector<32x64xbf16>, vector<48x64xf32> -> vector<48x64xf32>
    %c0_67 = arith.constant 0 : index
    %c0_68 = arith.constant 0 : index
    %c0_69 = arith.constant 0 : index
    %141 = vector.load %arg20[%c0_67, %c0_68, %c0_69] : memref<1x1x64xf32, #tpu.memory_space<vmem>>, vector<1x1x64xf32>
    %142 = vector.shape_cast %141 : vector<1x1x64xf32> to vector<1x64xf32>
    %143 = vector.broadcast %142 : vector<1x64xf32> to vector<48x64xf32>
    %144 = arith.addf %140, %143 : vector<48x64xf32>
    %cst_70 = arith.constant 5.000000e-01 : f32
    %145 = vector.broadcast %cst_70 : f32 to vector<48x64xf32>
    %146 = arith.mulf %145, %144 : vector<48x64xf32>
    %cst_71 = arith.constant 0.707106769 : f32
    %147 = vector.broadcast %cst_71 : f32 to vector<48x64xf32>
    %148 = arith.mulf %144, %147 : vector<48x64xf32>
    %149 = math.erf %148 : vector<48x64xf32>
    %cst_72 = arith.constant 1.000000e+00 : f32
    %150 = vector.broadcast %cst_72 : f32 to vector<48x64xf32>
    %151 = arith.addf %150, %149 : vector<48x64xf32>
    %152 = arith.mulf %146, %151 : vector<48x64xf32>
    %153 = arith.truncf %152 : vector<48x64xf32> to vector<48x64xbf16>
    %c0_73 = arith.constant 0 : index
    %c0_74 = arith.constant 0 : index
    %c0_75 = arith.constant 0 : index
    %154 = vector.load %arg21[%c0_73, %c0_74, %c0_75] : memref<1x64x32xbf16, #tpu.memory_space<vmem>>, vector<1x64x32xbf16>
    %155 = vector.shape_cast %154 : vector<1x64x32xbf16> to vector<64x32xbf16>
    %cst_76 = arith.constant dense<0.000000e+00> : vector<48x32xf32>
    %156 = tpu.matmul %153, %155, %cst_76 {dimension_numbers = #tpu.dot_dimension_numbers<[1], [0], [0], [1], [0, 0, 1, 1], [], []>} : vector<48x64xbf16>, vector<64x32xbf16>, vector<48x32xf32> -> vector<48x32xf32>
    %157 = arith.addf %112, %156 : vector<48x32xf32>
    %c0_77 = arith.constant 0 : index
    %c0_78 = arith.constant 0 : index
    %c0_79 = arith.constant 0 : index
    %158 = vector.load %arg22[%c0_77, %c0_78, %c0_79] : memref<1x1x32xf32, #tpu.memory_space<vmem>>, vector<1x1x32xf32>
    %159 = vector.shape_cast %158 : vector<1x1x32xf32> to vector<1x32xf32>
    %160 = vector.broadcast %159 : vector<1x32xf32> to vector<48x32xf32>
    %161 = arith.addf %157, %160 : vector<48x32xf32>
    %c0_80 = arith.constant 0 : index
    %c0_81 = arith.constant 0 : index
    %162 = vector.load %arg26[%c0_80, %c0_81] : memref<48x32xf32, #tpu.memory_space<vmem>>, vector<48x32xf32>
    tpu.vector_store %arg26[%c0_80, %c0_81], %161 {strides = array<i32>} : memref<48x32xf32, #tpu.memory_space<vmem>>, vector<48x32xf32>,
    %c1_i32 = arith.constant 1 : i32
    %163 = arith.cmpi eq, %arg1, %c1_i32 : i32
    %164 = arith.extui %163 : i1 to i32
    %c0_i32_82 = arith.constant 0 : i32
    %165 = arith.cmpi ne, %164, %c0_i32_82 : i32
    scf.if %165 {
      %166 = vector.shape_cast %161 : vector<48x32xf32> to vector<2x24x32xf32>
      %167 = vector.extract_strided_slice %166 {offsets = [0, 0, 0], sizes = [2, 1, 32], strides = [1, 1, 1]} : vector<2x24x32xf32> to vector<2x1x32xf32>
      %168 = vector.shape_cast %167 : vector<2x1x32xf32> to vector<2x32xf32>
      %c0_83 = arith.constant 0 : index
      %c0_84 = arith.constant 0 : index
      %169 = vector.load %arg23[%c0_83, %c0_84] : memref<1x32xf32, #tpu.memory_space<vmem>>, vector<1x32xf32>
      %c0_85 = arith.constant 0 : index
      %c0_86 = arith.constant 0 : index
      %170 = vector.load %arg24[%c0_85, %c0_86] : memref<1x32xf32, #tpu.memory_space<vmem>>, vector<1x32xf32>
      %cst_87 = arith.constant dense<0.000000e+00> : vector<2xf32>
      %171 = vector.multi_reduction <add>, %168, %cst_87 [1] : vector<2x32xf32> to vector<2xf32>
      %172 = vector.shape_cast %171 : vector<2xf32> to vector<2x1xf32>
      %cst_88 = arith.constant 3.200000e+01 : f32
      %173 = vector.broadcast %cst_88 : f32 to vector<2x1xf32>
      %174 = arith.divf %172, %173 : vector<2x1xf32>
      %175 = vector.broadcast %174 : vector<2x1xf32> to vector<2x32xf32>
      %176 = arith.subf %168, %175 : vector<2x32xf32>
      %177 = arith.mulf %176, %176 : vector<2x32xf32>
      %cst_89 = arith.constant dense<0.000000e+00> : vector<2xf32>
      %178 = vector.multi_reduction <add>, %177, %cst_89 [1] : vector<2x32xf32> to vector<2xf32>
      %179 = vector.shape_cast %178 : vector<2xf32> to vector<2x1xf32>
      %cst_90 = arith.constant 3.200000e+01 : f32
      %180 = vector.broadcast %cst_90 : f32 to vector<2x1xf32>
      %181 = arith.divf %179, %180 : vector<2x1xf32>
      %cst_91 = arith.constant 9.99999974E-6 : f32
      %182 = vector.broadcast %cst_91 : f32 to vector<2x1xf32>
      %183 = arith.addf %181, %182 : vector<2x1xf32>
      %184 = math.rsqrt %183 : vector<2x1xf32>
      %185 = vector.broadcast %184 : vector<2x1xf32> to vector<2x32xf32>
      %186 = arith.mulf %176, %185 : vector<2x32xf32>
      %187 = vector.broadcast %169 : vector<1x32xf32> to vector<2x32xf32>
      %188 = arith.mulf %186, %187 : vector<2x32xf32>
      %189 = vector.broadcast %170 : vector<1x32xf32> to vector<2x32xf32>
      %190 = arith.addf %188, %189 : vector<2x32xf32>
      %191 = vector.shape_cast %190 : vector<2x32xf32> to vector<1x2x32xf32>
      %c0_92 = arith.constant 0 : index
      %c0_93 = arith.constant 0 : index
      %c0_94 = arith.constant 0 : index
      %192 = vector.load %arg25[%c0_92, %c0_93, %c0_94] : memref<1x2x32xf32, #tpu.memory_space<vmem>>, vector<1x2x32xf32>
      tpu.vector_store %arg25[%c0_92, %c0_93, %c0_94], %191 {strides = array<i32>} : memref<1x2x32xf32, #tpu.memory_space<vmem>>, vector<1x2x32xf32>,
    } else {
    }
    return
  }
  func.func @transform_0(%arg0: i32, %arg1: i32) -> (i32, i32, i32) {
    %c0_i32 = arith.constant 0 : i32
    %c0_i32_0 = arith.constant 0 : i32
    %c0_i32_1 = arith.constant 0 : i32
    return %arg0, %c0_i32, %c0_i32_0 : i32, i32, i32
  }
  func.func @transform_1(%arg0: i32, %arg1: i32) -> (i32, i32) {
    %c0_i32 = arith.constant 0 : i32
    %c0_i32_0 = arith.constant 0 : i32
    %c0_i32_1 = arith.constant 0 : i32
    return %c0_i32, %c0_i32_0 : i32, i32
  }
  func.func @transform_2(%arg0: i32, %arg1: i32) -> (i32, i32) {
    %c0_i32 = arith.constant 0 : i32
    %c0_i32_0 = arith.constant 0 : i32
    %c0_i32_1 = arith.constant 0 : i32
    return %c0_i32, %c0_i32_0 : i32, i32
  }
  func.func @transform_3(%arg0: i32, %arg1: i32) -> (i32, i32) {
    %c0_i32 = arith.constant 0 : i32
    %c0_i32_0 = arith.constant 0 : i32
    %c0_i32_1 = arith.constant 0 : i32
    return %c0_i32, %c0_i32_0 : i32, i32
  }
  func.func @transform_4(%arg0: i32, %arg1: i32) -> (i32, i32) {
    %c0_i32 = arith.constant 0 : i32
    %c0_i32_0 = arith.constant 0 : i32
    %c0_i32_1 = arith.constant 0 : i32
    return %c0_i32, %c0_i32_0 : i32, i32
  }
  func.func @transform_5(%arg0: i32, %arg1: i32) -> (i32, i32, i32) {
    %c0_i32 = arith.constant 0 : i32
    %c0_i32_0 = arith.constant 0 : i32
    %c0_i32_1 = arith.constant 0 : i32
    return %arg1, %c0_i32, %c0_i32_0 : i32, i32, i32
  }
  func.func @transform_6(%arg0: i32, %arg1: i32) -> (i32, i32, i32) {
    %c0_i32 = arith.constant 0 : i32
    %c0_i32_0 = arith.constant 0 : i32
    %c0_i32_1 = arith.constant 0 : i32
    return %arg1, %c0_i32, %c0_i32_0 : i32, i32, i32
  }
  func.func @transform_7(%arg0: i32, %arg1: i32) -> (i32, i32, i32) {
    %c0_i32 = arith.constant 0 : i32
    %c0_i32_0 = arith.constant 0 : i32
    %c0_i32_1 = arith.constant 0 : i32
    return %arg1, %c0_i32, %c0_i32_0 : i32, i32, i32
  }
  func.func @transform_8(%arg0: i32, %arg1: i32) -> (i32, i32, i32) {
    %c0_i32 = arith.constant 0 : i32
    %c0_i32_0 = arith.constant 0 : i32
    %c0_i32_1 = arith.constant 0 : i32
    return %arg1, %c0_i32, %c0_i32_0 : i32, i32, i32
  }
  func.func @transform_9(%arg0: i32, %arg1: i32) -> (i32, i32, i32) {
    %c0_i32 = arith.constant 0 : i32
    %c0_i32_0 = arith.constant 0 : i32
    %c0_i32_1 = arith.constant 0 : i32
    return %arg1, %c0_i32, %c0_i32_0 : i32, i32, i32
  }
  func.func @transform_10(%arg0: i32, %arg1: i32) -> (i32, i32, i32) {
    %c0_i32 = arith.constant 0 : i32
    %c0_i32_0 = arith.constant 0 : i32
    %c0_i32_1 = arith.constant 0 : i32
    return %arg1, %c0_i32, %c0_i32_0 : i32, i32, i32
  }
  func.func @transform_11(%arg0: i32, %arg1: i32) -> (i32, i32, i32) {
    %c0_i32 = arith.constant 0 : i32
    %c0_i32_0 = arith.constant 0 : i32
    %c0_i32_1 = arith.constant 0 : i32
    return %arg1, %c0_i32, %c0_i32_0 : i32, i32, i32
  }
  func.func @transform_12(%arg0: i32, %arg1: i32) -> (i32, i32, i32) {
    %c0_i32 = arith.constant 0 : i32
    %c0_i32_0 = arith.constant 0 : i32
    %c0_i32_1 = arith.constant 0 : i32
    return %arg1, %c0_i32, %c0_i32_0 : i32, i32, i32
  }
  func.func @transform_13(%arg0: i32, %arg1: i32) -> (i32, i32, i32) {
    %c0_i32 = arith.constant 0 : i32
    %c0_i32_0 = arith.constant 0 : i32
    %c0_i32_1 = arith.constant 0 : i32
    return %arg1, %c0_i32, %c0_i32_0 : i32, i32, i32
  }
  func.func @transform_14(%arg0: i32, %arg1: i32) -> (i32, i32, i32) {
    %c0_i32 = arith.constant 0 : i32
    %c0_i32_0 = arith.constant 0 : i32
    %c0_i32_1 = arith.constant 0 : i32
    return %arg1, %c0_i32, %c0_i32_0 : i32, i32, i32
  }
  func.func @transform_15(%arg0: i32, %arg1: i32) -> (i32, i32, i32) {
    %c0_i32 = arith.constant 0 : i32
    %c0_i32_0 = arith.constant 0 : i32
    %c0_i32_1 = arith.constant 0 : i32
    return %arg1, %c0_i32, %c0_i32_0 : i32, i32, i32
  }
  func.func @transform_16(%arg0: i32, %arg1: i32) -> (i32, i32, i32) {
    %c0_i32 = arith.constant 0 : i32
    %c0_i32_0 = arith.constant 0 : i32
    %c0_i32_1 = arith.constant 0 : i32
    return %arg1, %c0_i32, %c0_i32_0 : i32, i32, i32
  }
  func.func @transform_17(%arg0: i32, %arg1: i32) -> (i32, i32, i32) {
    %c0_i32 = arith.constant 0 : i32
    %c0_i32_0 = arith.constant 0 : i32
    %c0_i32_1 = arith.constant 0 : i32
    return %arg1, %c0_i32, %c0_i32_0 : i32, i32, i32
  }
  func.func @transform_18(%arg0: i32, %arg1: i32) -> (i32, i32, i32) {
    %c0_i32 = arith.constant 0 : i32
    %c0_i32_0 = arith.constant 0 : i32
    %c0_i32_1 = arith.constant 0 : i32
    return %arg1, %c0_i32, %c0_i32_0 : i32, i32, i32
  }
  func.func @transform_19(%arg0: i32, %arg1: i32) -> (i32, i32, i32) {
    %c0_i32 = arith.constant 0 : i32
    %c0_i32_0 = arith.constant 0 : i32
    %c0_i32_1 = arith.constant 0 : i32
    return %arg1, %c0_i32, %c0_i32_0 : i32, i32, i32
  }
  func.func @transform_20(%arg0: i32, %arg1: i32) -> (i32, i32, i32) {
    %c0_i32 = arith.constant 0 : i32
    %c0_i32_0 = arith.constant 0 : i32
    %c0_i32_1 = arith.constant 0 : i32
    return %arg1, %c0_i32, %c0_i32_0 : i32, i32, i32
  }
  func.func @transform_21(%arg0: i32, %arg1: i32) -> (i32, i32) {
    %c0_i32 = arith.constant 0 : i32
    %c0_i32_0 = arith.constant 0 : i32
    %c0_i32_1 = arith.constant 0 : i32
    return %c0_i32, %c0_i32_0 : i32, i32
  }
  func.func @transform_22(%arg0: i32, %arg1: i32) -> (i32, i32) {
    %c0_i32 = arith.constant 0 : i32
    %c0_i32_0 = arith.constant 0 : i32
    %c0_i32_1 = arith.constant 0 : i32
    return %c0_i32, %c0_i32_0 : i32, i32
  }
  func.func @transform_23(%arg0: i32, %arg1: i32) -> (i32, i32, i32) {
    %c0_i32 = arith.constant 0 : i32
    %c0_i32_0 = arith.constant 0 : i32
    %c0_i32_1 = arith.constant 0 : i32
    return %arg0, %c0_i32, %c0_i32_0 : i32, i32, i32
  }
}

</mosaic_0001>

<bundles_post_ra>
// kernel: vision_encoder_forward.1
= control target key start
LH: loop header
LB: loop body
LE: loop exit
PB: predicated region body
PF: predicated region fallthrough
CT: control target
= control target key end

     0   :  { %s4315_s0 = inlined_call_operand.vmem [shape: bf16[2,32,48], index: 0, kind: input, shape index: {}]   ;;  %s4316_s1 = inlined_call_operand.vmem [shape: bf16[48,32], index: 1, kind: input, shape index: {}]   ;;  %s4317_s2 = inlined_call_operand.vmem [shape: f32[1,32], index: 2, kind: input, shape index: {}]   ;;  %s4318_s3 = inlined_call_operand.vmem [shape: f32[1,32], index: 3, kind: input, shape index: {}]   ;;  %s4319_s4 = inlined_call_operand.vmem [shape: f32[16,32], index: 4, kind: input, shape index: {}]   ;;  %s4320_s5 = inlined_call_operand.vmem [shape: f32[2,1,32], index: 5, kind: input, shape index: {}]   ;;  %s4321_s6 = inlined_call_operand.vmem [shape: f32[2,1,32], index: 6, kind: input, shape index: {}]   ;;  %s4322_s7 = inlined_call_operand.vmem [shape: bf16[2,32,32], index: 7, kind: input, shape index: {}]   ;;  %s4323_s8 = inlined_call_operand.vmem [shape: bf16[2,32,32], index: 8, kind: input, shape index: {}]   ;;  %s4324_s9 = inlined_call_operand.vmem [shape: bf16[2,32,32], index: 9, kind: input, shape index: {}]   ;;  %s4325_s10 = inlined_call_operand.vmem [shape: f32[2,1,32], index: 10, kind: input, shape index: {}]   ;;  %s4326_s11 = inlined_call_operand.vmem [shape: f32[2,1,32], index: 11, kind: input, shape index: {}]   ;;  %s4327_s12 = inlined_call_operand.vmem [shape: f32[2,1,32], index: 12, kind: input, shape index: {}]   ;;  %s4328_s13 = inlined_call_operand.vmem [shape: bf16[2,32,32], index: 13, kind: input, shape index: {}]   ;;  %s4329_s14 = inlined_call_operand.vmem [shape: f32[2,1,32], index: 14, kind: input, shape index: {}]   ;;  %s4330_s15 = inlined_call_operand.vmem [shape: f32[2,1,32], index: 15, kind: input, shape index: {}]   ;;  %s4331_s16 = inlined_call_operand.vmem [shape: f32[2,1,32], index: 16, kind: input, shape index: {}]   ;;  %s4332_s17 = inlined_call_operand.vmem [shape: bf16[2,32,64], index: 17, kind: input, shape index: {}]   ;;  %s4333_s18 = inlined_call_operand.vmem [shape: f32[2,1,64], index: 18, kind: input, shape index: {}]   ;;  %s4334_s19 = inlined_call_operand.vmem [shape: bf16[2,64,32], index: 19, kind: input, shape index: {}]   ;;  %s4335_s20 = inlined_call_operand.vmem [shape: f32[2,1,32], index: 20, kind: input, shape index: {}]   ;;  %s4336_s21 = inlined_call_operand.vmem [shape: f32[1,32], index: 21, kind: input, shape index: {}]   ;;  %s4337_s22 = inlined_call_operand.vmem [shape: f32[1,32], index: 22, kind: input, shape index: {}]   ;;  %s4338_s23 = inlined_call_operand.hbm [shape: f32[2,2,32], index: 23, kind: output, shape index: {}]  }
   0x1   :  { %4357 = sst [smem:[#allocation20_spill]] %s4315_s0 }
   0x2   :  { %4358 = sst [smem:[#allocation21_spill]] %s4316_s1 }
   0x3   :  { %4359 = sst [smem:[#allocation22_spill]] %s4317_s2 }
   0x4   :  { %4360 = sst [smem:[#allocation23_spill]] %s4318_s3 }
   0x5   :  { %4361 = sst [smem:[#allocation24_spill]] %s4319_s4 }
   0x6   :  { %4362 = sst [smem:[#allocation25_spill]] %s4320_s5 }
   0x7   :  { %4363 = sst [smem:[#allocation26_spill]] %s4321_s6 }
   0x8   :  { %4364 = sst [smem:[#allocation27_spill]] %s4322_s7 }
   0x9   :  { %4365 = sst [smem:[#allocation28_spill]] %s4323_s8 }
   0xa   :  { %4366 = sst [smem:[#allocation29_spill]] %s4324_s9 }
   0xb   :  { %4367 = sst [smem:[#allocation30_spill]] %s4328_s13 }
   0xc   :  { %4368 = sst [smem:[#allocation31_spill]] %s4329_s14 }
   0xd   :  { %4369 = sst [smem:[#allocation32_spill]] %s4330_s15 }
   0xe   :  { %4370 = sst [smem:[#allocation33_spill]] %s4334_s19 }
   0xf   :  { %4371 = sst [smem:[#allocation34_spill]] %s4335_s20 }
  0x10   :  { %4372 = sst [smem:[#allocation35_spill]] %s4336_s21 }
  0x11   :  { %4373 = sst [smem:[#allocation36_spill]] %s4337_s22 }
  0x12   :  { %4374 = sst [smem:[#allocation37_spill]] %s4338_s23 }
  0x13   :  { %28 = vsyncpa [#allocation4], 0 }
  0x14   :  { %30 = vsyncpa [#allocation4 + $0x1], 0  ;;  %s3502_s4 = smov 0   ;;  %s3504_s30 = smov 0  }
  0x15   :  { %s3506_s24 = smov 0   ;;  %s3508_s25 = smov 0  }
  0x16   :  { %s3510_s5 = smov 0   ;;  %s3512_s1 = smov 0  }
  0x17   :  { %s3514_s26 = smov 0   ;;  %s3516_s2 = smov 0  }
  0x18 LB: > { %4375 = sst [smem:[#allocation6_spill]] %s3348_s4  ;;  %s2908_s6 = sadd.s32 4294967295, %s3376_s2   ;;  %s3376_s2 = sphi %s3516_s2, %s36_s2   ;;  %s3372_s26 = sphi %s3514_s26, %s4441_s26   ;;  %s3368_s1 = sphi %s3512_s1, %s4440_s1   ;;  %s3364_s5 = sphi %s3510_s5, %s4439_s5   ;;  %s3360_s25 = sphi %s3508_s25, %s4438_s25   ;;  %s3356_s24 = sphi %s3506_s24, %s4437_s24   ;;  %s3352_s30 = sphi %s3504_s30, %s4436_s30   ;;  %s3348_s4 = sphi %s3502_s4, %s4435_s4  }
  0x19   : > { %4376 = sst [smem:[#allocation7_spill]] %s3352_s30  ;;  %s2909_s27 = sadd.s32 4294967294, %s3376_s2  }
  0x1a   : > { %4377 = sst [smem:[#allocation8_spill]] %s3356_s24  ;;  %s45_s7 = sadd.s32 1, %s3368_s1 }
  0x1b   : > { %4378 = sst [smem:[#allocation9_spill]] %s3360_s25  ;;  %p46_p0 = scmp.ge.s32.totalorder %s45_s7, 2 }
  0x1c   : > { %4379 = sst [smem:[#allocation10_spill]] %s3364_s5  ;;  %s48_s28 = sadd.s32 1, %s3372_s26 }
  0x1d   : > { %4380 = sst [smem:[#allocation11_spill]] %s3368_s1  ;;  %p633_p1 = scmp.ne.s32.totalorder %s3356_s24, %s3352_s30 }
  0x1e   : > { %4381 = sst [smem:[#allocation12_spill]] %s3372_s26  ;;  %p634_p2 = scmp.eq.s32.totalorder %s2908_s6, 3 }
  0x1f   : > { %4382 = sst [smem:[#allocation13_spill]] %s3376_s2  ;;  %s4443_s7 = smov (%p46_p0, %s45_s7), 0 }
  0x20   : > { %4383 = sst [smem:[#allocation14_spill]] %s4443_s7  ;;  %s4445_s28 = smov (!%p46_p0, %s48_s28), %s3372_s26 }
  0x21   : > { %p3551_p3 = por %p634_p2, %p633_p1  ;;  %p639_p4 = scmp.ne.s32.totalorder %s3352_s30, %s3348_s4 }
  0x22   : > { %p50_p5 = scmp.ge.s32.totalorder %s4445_s28, 2  ;;  %p640_p6 = scmp.eq.s32.totalorder %s2909_s27, 3 }
  0x23   : > { %s4384_s29 = scalar_select %p3551_p3, 1, 0 }
  0x24   : > { %p2912_p7 = scmp.ge.s32.totalorder %s3376_s2, 1  ;;  %p792_p8 = scmp.lt.s32.totalorder %s3376_s2, 5 }
  0x25   : > { %4385 = sst [smem:[#allocation15_spill]] %s4384_s29  ;;  %s4447_s28 = smov (%p50_p5, %s4445_s28), 0 }
  0x26   : > { %4386 = sst [smem:[#allocation16_spill]] %s4447_s28  ;;  %p3561_p9 = por %p640_p6, %p639_p4 }
  0x27   : > { %p793_p10 = pnand %p2912_p7, %p792_p8  ;;  %s620_s0 = ssub.s32 %s3372_s26, %s4447_s28 }
  0x28   : > { %s4387_s3 = scalar_select %p3561_p9, 1, 0 }
  0x29   : > { %s623_s6 = sadd.s32 1, %s3356_s24  ;;  %p621_p11 = scmp.eq.s32.totalorder %s620_s0, 0 }
  0x2a   : > { %4388 = sst [smem:[#allocation17_spill]] %s4387_s3  ;;  %796 = sbr.rel (%p793_p10) target bundleno = 2609 (0xa31), region = 112 }
  0x2b   : > { %s3569_s7 = scalar_select %p621_p11, %s3356_s24, %s623_s6  }
  0x2d   : > { %4389 = sst [smem:[#allocation18_spill]] %s3569_s7 }
  0x2f   : > { %s4346_s27 = sand.u32 1, %s3352_s30   ;;  %p916_p12 = scmp.lt.s32.totalorder %s3364_s5, 1 }
  0x30   : > { %s3575_s1 = sshll.u32 %s4346_s27, 1  ;;  %p921_p13 = scmp.lt.s32.totalorder %s3360_s25, 1 }
  0x31   : > { %s917_s3 = scalar_select %p916_p12, %s3364_s5, 1 }
  0x32   : > { %s3580_s4 = scalar_select %p921_p13, %s3360_s25, 1 }
  0x33   : > { %s3052_s0 = sshll.u32 %s917_s3, 4  ;;  %s4390_s26 = sld [smem:[#allocation20_spill]] }
  0x34   : > { %s3053_s21 = sshll.u32 %s3580_s4, 4  ;;  %s4393_s20 = sld [smem:[#allocation27_spill]] }
  0x35   : > { %s4394_s8 = sld [smem:[#allocation28_spill]]  ;;  %s3641_s25 = scalar_lea.vmem %s4332_s17, %s3053_s21 }
  0x36   : > { %s4396_s9 = sld [smem:[#allocation29_spill]]  ;;  %s972_s23 = scalar_lea.vmem %s4333_s18, %s3580_s4 }
  0x37   : > { %s4397_s13 = sld [smem:[#allocation30_spill]]  ;;  %s915_s5 = scalar_lea.vmem [#allocation3], %s3575_s1 }
  0x38   : > { %s4401_s29 = sld [smem:[#allocation33_spill]] }
  0x39   : > { %s920_s27 = scalar_lea.vmem %s4390_s26, %s3052_s0  ;;  %s964_s0 = scalar_lea.vmem %s4331_s16, %s3580_s4 }
  0x3a   : > { %s3597_s3 = scalar_lea.vmem %s4393_s20, %s3053_s21  ;;  %s4402_s22 = sld [smem:[#allocation9_spill]] }
  0x3b   : > { %s3602_s26 = scalar_lea.vmem %s4394_s8, %s3053_s21 }
  0x3c   : > { %4395 = sst [smem:[#allocation19_spill]] %s3602_s26  ;;  %s3607_s2 = scalar_lea.vmem %s4396_s9, %s3053_s21 }
  0x3d   : > { %s3624_s8 = scalar_lea.vmem %s4397_s13, %s3053_s21  ;;  %s3058_s13 = sshll.u32 %s3580_s4, 5 }
  0x3e   : > { %s4400_s9 = sld [smem:[#allocation34_spill]]  ;;  %s3655_s15 = scalar_lea.vmem %s4401_s29, %s3058_s13 }
  0x40   : > { %p2928_p0 = scmp.ne.s32.totalorder %s4402_s22, 0 }
  0x41   : > { %s4403_s20 = sld [smem:[#allocation21_spill]] (!%p2928_p0) }
  0x42   : > { %985 = sbr.rel (%p2928_p0) target bundleno = 228 (0xe4), region = 116  ;;  %s4404_s7 = sld [smem:[#allocation22_spill]] (!%p2928_p0) }
  0x43   : > { %s4405_s22 = sld [smem:[#allocation24_spill]] (!%p2928_p0) }
  0x44   : > { %s980_s14 = scalar_lea.vmem %s4400_s9, %s3580_s4  ;;  %s4406_s19 = sld [smem:[#allocation23_spill]] (!%p2928_p0) }
  0x47   : > { %v3063_v0 = vld [vmem:[%s4403_s20 + $0x10] sm:$0xff]  ;;  %v3062_v1 = vld [vmem:[%s4403_s20 + $0x8] sm:$0xff]  ;;  %v3061_v2 = vld [vmem:[%s4403_s20] sm:$0xff]  ;;  %vm1024_vm0 = vcmask 392192   ;;  %vm1069_vm1 = vcmask 1040384   ;;  %vm1086_vm2 = vcmask 261120  }
  0x48   : > { %1036 = vmatpush.bf16.msra.mxu0 %v3063_v0  ;;  %3078 = vmatpush.bf16.msra.mxu1 %v3063_v0  ;;  %v3059_v3 = vld [vmem:[%s920_s27] sm:$0xff]  ;;  %v3060_v4 = vld [vmem:[%s920_s27 + $0x8] sm:$0xff] }
  0x49   : > { %v3160_v5 = vld [vmem:[%s4404_s7] ss:$0 sm:$0xff]  ;;  %v1059_v19 = vld [vmem:[%s4405_s22 + $0x8] sm:$0xff] }
  0x4a   : > { %v1058_v7 = vld [vmem:[%s4405_s22] sm:$0xff] }
  0x4b   : > { %v1064_v13 = vld [vmem:[%s4406_s19] sm:$0x1] }
  0x4c   : > { %1037 = vmatpush.bf16.msra.mxu0 %v3062_v1  ;;  %3079 = vmatpush.bf16.msra.mxu1 %v3062_v1 }
  0x50   : > { %1038 = vmatpush.bf16.msra.mxu0 %v3061_v2  ;;  %3080 = vmatpush.bf16.msra.mxu1 %v3061_v2 }
  0x53   : > { %2949 = vmatmul.msk.bf16.vlgmr.msra.gmra.mxu0 %vm1024_vm0, %v3059_v3  ;;  %2950 = vmatmul.msk.bf16.vlgmr.msra.gmra.mxu1 %vm1024_vm0, %v3060_v4 }
  0xd0   : > { %v1040_v6 = vpop.f32.mrf.mxu0  ;;  %v1045_v8 = vpop.f32.mrf.mxu1 }
  0xd1   : > { %v1054_v9 = vadd.f32 %v3160_v5, %v1040_v6  ;;  %v1056_v10 = vadd.f32 %v3160_v5, %v1045_v8 }
  0xd3   : > { %v1060_v11 = vadd.f32 %v1058_v7, %v1054_v9  ;;  %v1062_v12 = vadd.f32 %v1058_v7, %v1056_v10 }
  0xd5   : > { %v1070_v14 = vrot.slane %v1060_v11, 7  ;;  %v1073_v15 = vrot.slane %v1062_v12, 7 }
  0xd7   : > { %v1082_v16 = vsel %vm1069_vm1, %v1064_v13, %v1070_v14  ;;  %v1083_v17 = vsel %vm1069_vm1, %v1064_v13, %v1073_v15 }
  0xd8   : > { %1087 = vst.msk [vmem:[#allocation2] sm:$0xff] %vm1086_vm2, %v1082_v16  ;;  %v1042_v18 = vpop.f32.mrf.mxu0  ;;  %v1047_v20 = vpop.f32.mrf.mxu1 }
  0xd9   : > { %1090 = vst.msk [vmem:[#allocation2 + $0x18] sm:$0xff] %vm1086_vm2, %v1083_v17  ;;  %v1055_v21 = vadd.f32 %v3160_v5, %v1042_v18  ;;  %v1057_v22 = vadd.f32 %v3160_v5, %v1047_v20 }
  0xdb   : > { %v1061_v23 = vadd.f32 %v1059_v19, %v1055_v21  ;;  %v1063_v24 = vadd.f32 %v1059_v19, %v1057_v22 }
  0xdd   : > { %v1071_v25 = vrot.slane %v1061_v23, 7  ;;  %v1074_v26 = vrot.slane %v1063_v24, 7 }
  0xdf   : > { %v1072_v27 = vsel %vm1069_vm1, %v1070_v14, %v1071_v25  ;;  %v1084_v28 = vsel %vm1069_vm1, %v1071_v25, 0.0  ;;  %v1075_v29 = vsel %vm1069_vm1, %v1073_v15, %v1074_v26  ;;  %v1085_v30 = vsel %vm1069_vm1, %v1074_v26, 0.0 }
  0xe0   : > { %1088 = vst.msk [vmem:[#allocation2 + $0x8] sm:$0xff] %vm1086_vm2, %v1072_v27 }
  0xe1   : > { %1089 = vst.msk [vmem:[#allocation2 + $0x10] sm:$0xff] %vm1086_vm2, %v1084_v28 }
  0xe2   : > { %1091 = vst.msk [vmem:[#allocation2 + $0x20] sm:$0xff] %vm1086_vm2, %v1075_v29 }
  0xe3   : > { %1092 = vst.msk [vmem:[#allocation2 + $0x28] sm:$0xff] %vm1086_vm2, %v1085_v30 }
  0xe4 PF: > { %vm1105_vm3 = vcmask 261120   ;;  %v1097_v33 = vld [vmem:[#allocation2] sm:$0xff]  ;;  %v1100_v38 = vld [vmem:[#allocation2 + $0x18] sm:$0xff]  ;;  %v3378_v43 = vmov 32.0   ;;  %v3065_v18 = vld [vmem:[%s3597_s3 + $0x8] sm:$0xff]  ;;  %s4407_s9 = sld [smem:[#allocation25_spill]]  ;;  %s4416_s19 = scalar_lea.vmem %s4325_s10, %s3580_s4 }
  0xe5   : > { %v1106_v36 = vsel %vm1105_vm3, %v1097_v33, 0.0  ;;  %v1115_v41 = vsel %vm1105_vm3, %v1100_v38, 0.0  ;;  %3186 = vrcp.f32 %v3378_v43  ;;  %3081 = vmatpush.bf16.msra.mxu1 %v3065_v18  ;;  %1301 = vmatpush.bf16.msra.mxu0 %v3065_v18  ;;  %v3064_v22 = vld [vmem:[%s3597_s3] sm:$0xff]  ;;  %v3069_v24 = vld [vmem:[%s3607_s2 + $0x8] sm:$0xff]  ;;  %s4409_s13 = sld [smem:[#allocation19_spill]]  ;;  %s3379_s28 = smov 112  }
  0xe6   : > { %1107 = vadd.xlane.f32.xlu2 %v1106_v36  ;;  %1389 = vmatpush.bf16.msra.mxu2 %v3069_v24  ;;  %v3068_v30 = vld [vmem:[%s3607_s2] sm:$0xff]  ;;  %s4412_s26 = sld [smem:[#allocation26_spill]]  ;;  %s4417_s2 = scalar_lea.vmem %s4326_s11, %s3580_s4 }
  0xe7   : > { %v1098_v39 = vld [vmem:[#allocation2 + $0x8] sm:$0xff]  ;;  %s3381_s29 = smov 16   ;;  %s4421_s21 = sld [smem:[#allocation32_spill]] }
  0xe8   : > { %v1099_v32 = vld [vmem:[#allocation2 + $0x10] sm:$0xff]  ;;  %v1109_v42 = vsel %vm1105_vm3, %v1098_v39, 0.0 }
  0xe9   : > { %v1101_v31 = vld [vmem:[#allocation2 + $0x20] sm:$0xff]  ;;  %v1112_v35 = vsel %vm1105_vm3, %v1099_v32, 0.0  ;;  %3082 = vmatpush.bf16.msra.mxu1 %v3064_v22  ;;  %1302 = vmatpush.bf16.msra.mxu0 %v3064_v22 }
  0xea   : > { %v1118_v34 = vsel %vm1105_vm3, %v1101_v31, 0.0  ;;  %1113 = vadd.xlane.f32.xlu0 %v1112_v35  ;;  %v1102_v37 = vld [vmem:[#allocation2 + $0x28] sm:$0xff]  ;;  %1390 = vmatpush.bf16.msra.mxu2 %v3068_v30  ;;  %s4408_s24 = scalar_lea.vmem %s4407_s9, %s3580_s4 }
  0xeb   : > { %1119 = vadd.xlane.f32.xlu1 %v1118_v34  ;;  %v1121_v40 = vsel %vm1105_vm3, %v1102_v37, 0.0  ;;  %v3187_v44 = vpop.eup %3186  ;;  %v3066_v24 = vld [vmem:[%s4409_s13] sm:$0xff] }
  0xec   : > { %v1125_v45 = vmul.f32 32.0, %v3187_v44  ;;  %vm1129_vm4 = vweird.f32 %v3187_v44  ;;  %s4413_s30 = scalar_lea.vmem %s4412_s26, %s3580_s4  ;;  %s4419_s26 = sld [smem:[#allocation31_spill]] }
  0xed   : > { %v3177_v18 = vld [vmem:[%s4413_s30] ss:$0 sm:$0xff] }
  0xee   : > { %1110 = vadd.xlane.f32.xlu2 %v1109_v42  ;;  %v1126_v46 = vsub.f32 1.0, %v1125_v45 }
  0xf0   : > { %v1127_v47 = vmul.f32 %v3187_v44, %v1126_v46 }
  0xf2   : > { %1116 = vadd.xlane.f32.xlu0 %v1115_v41  ;;  %v1128_v48 = vadd.f32 %v3187_v44, %v1127_v47  ;;  %s4420_s30 = scalar_lea.vmem %s4419_s26, %s3580_s4 }
  0xf3   : > { %1122 = vadd.xlane.f32.xlu1 %v1121_v40 }
  0xf4   : > { %v3698_v49 = vsel %vm1129_vm4, %v3187_v44, %v1128_v48 }
 0x159   : > { %v1108_v54 = vpop.xlane.xlu2 %1107 }
 0x15a   : > { %v1131_v63 = vmul.f32 %v3698_v49, %v1108_v54 }
 0x15c   : > { %v3722_v7 = vsub.f32 %v1097_v33, %v1131_v63 }
 0x15d   : > { %v1114_v51 = vpop.xlane.xlu0 %1113 }
 0x15e   : > { %v1120_v50 = vpop.xlane.xlu1 %1119  ;;  %v1133_v53 = vmul.f32 %v3698_v49, %v1114_v51  ;;  %v1143_v14 = vmul.f32 %v3722_v7, %v3722_v7 }
 0x15f   : > { %v1135_v52 = vmul.f32 %v3698_v49, %v1120_v50 }
 0x160   : > { %v3704_v56 = vsub.f32 %v1099_v32, %v1133_v53  ;;  %v1149_v15 = vsel %vm1105_vm3, %v1143_v14, 0.0 }
 0x161   : > { %v3702_v55 = vsub.f32 %v1101_v31, %v1135_v52  ;;  %v1111_v2 = vpop.xlane.xlu2 %1110 }
 0x162   : > { %v1145_v57 = vmul.f32 %v3704_v56, %v3704_v56  ;;  %v1132_v3 = vmul.f32 %v3698_v49, %v1111_v2 }
 0x163   : > { %v1147_v58 = vmul.f32 %v3702_v55, %v3702_v55 }
 0x164   : > { %v1155_v59 = vsel %vm1105_vm3, %v1145_v57, 0.0  ;;  %v3720_v6 = vsub.f32 %v1098_v39, %v1132_v3  ;;  %v3176_v3 = vld [vmem:[%s4408_s24] ss:$0 sm:$0xff] }
 0x165   : > { %v1161_v60 = vsel %vm1105_vm3, %v1147_v58, 0.0  ;;  %1156 = vadd.xlane.f32.xlu0 %v1155_v59  ;;  %v1117_v62 = vpop.xlane.xlu0 %1116 }
 0x166   : > { %v1123_v61 = vpop.xlane.xlu1 %1122  ;;  %1162 = vadd.xlane.f32.xlu2 %v1161_v60  ;;  %v1134_v1 = vmul.f32 %v3698_v49, %v1117_v62  ;;  %v1144_v10 = vmul.f32 %v3720_v6, %v3720_v6 }
 0x167   : > { %v1136_v0 = vmul.f32 %v3698_v49, %v1123_v61 }
 0x168   : > { %v3718_v5 = vsub.f32 %v1100_v38, %v1134_v1  ;;  %v1152_v13 = vsel %vm1105_vm3, %v1144_v10, 0.0 }
 0x169   : > { %v3716_v4 = vsub.f32 %v1102_v37, %v1136_v0 }
 0x16a   : > { %v1146_v9 = vmul.f32 %v3718_v5, %v3718_v5 }
 0x16b   : > { %v1148_v8 = vmul.f32 %v3716_v4, %v3716_v4 }
 0x16c   : > { %v1158_v12 = vsel %vm1105_vm3, %v1146_v9, 0.0 }
 0x16d   : > { %v1164_v11 = vsel %vm1105_vm3, %v1148_v8, 0.0  ;;  %1159 = vadd.xlane.f32.xlu1 %v1158_v12 }
 0x16e   : > { %1165 = vadd.xlane.f32.xlu0 %v1164_v11  ;;  %1153 = vadd.xlane.f32.xlu2 %v1152_v13 }
 0x175   : > { %1150 = vadd.xlane.f32.xlu1 %v1149_v15 }
 0x1d8   : > { %v1157_v16 = vpop.xlane.xlu0 %1156 }
 0x1d9   : > { %v1163_v17 = vpop.xlane.xlu2 %1162  ;;  %v1169_v19 = vmul.f32 %v1157_v16, %v3698_v49 }
 0x1da   : > { %v1171_v20 = vmul.f32 %v1163_v17, %v3698_v49 }
 0x1db   : > { %v1175_v21 = vadd.f32 1e-05, %v1169_v19  ;;  %v3067_v19 = vld [vmem:[%s4409_s13 + $0x8] sm:$0xff]  ;;  %s4418_s13 = scalar_lea.vmem %s4327_s12, %s3580_s4 }
 0x1dc   : > { %v3740_v23 = vadd.f32 1e-05, %v1171_v20  ;;  %1345 = vmatpush.bf16.msrb.mxu1 %v3067_v19 }
 0x1dd   : > { %3188 = vrsqrt.f32 %v1175_v21  ;;  %vm1205_vm6 = vweird.f32 %v1175_v21 }
 0x1de   : > { %3190 = vrsqrt.f32 %v3740_v23  ;;  %vm1225_vm2 = vweird.f32 %v3740_v23 }
 0x1e0   : > { %v1160_v25 = vpop.xlane.xlu1 %1159  ;;  %1346 = vmatpush.bf16.msrb.mxu1 %v3066_v24 }
 0x1e1   : > { %v1166_v26 = vpop.xlane.xlu0 %1165  ;;  %v1170_v27 = vmul.f32 %v1160_v25, %v3698_v49  ;;  %v1154_v29 = vpop.xlane.xlu2 %1153 }
 0x1e2   : > { %v1172_v28 = vmul.f32 %v1166_v26, %v3698_v49  ;;  %v1168_v31 = vmul.f32 %v1154_v29, %v3698_v49 }
 0x1e3   : > { %v3189_v32 = vpop.eup %3188  ;;  %v1176_v33 = vadd.f32 1e-05, %v1170_v27 }
 0x1e4   : > { %v3748_v34 = vadd.f32 1e-05, %v1172_v28  ;;  %v1200_v35 = vmul.f32 %v3189_v32, %v1175_v21  ;;  %v1174_v36 = vadd.f32 1e-05, %v1168_v31  ;;  %v3751_v38 = vpop.eup %3190  ;;  %vm1206_vm5 = vweird.f32 %v3189_v32 }
 0x1e5   : > { %3192 = vrsqrt.f32 %v1176_v33  ;;  %v1220_v44 = vmul.f32 %v3751_v38, %v3740_v23  ;;  %vm1207_vm7 = vmor %vm1205_vm6, %vm1206_vm5  ;;  %vm1215_vm11 = vweird.f32 %v1176_v33  ;;  %vm1226_vm4 = vweird.f32 %v3751_v38 }
 0x1e6   : > { %v1201_v37 = vmul.f32 %v3189_v32, %v1200_v35  ;;  %3194 = vrsqrt.f32 %v3748_v34  ;;  %vm1195_vm9 = vweird.f32 %v1174_v36  ;;  %vm1235_vm13 = vweird.f32 %v3748_v34 }
 0x1e7   : > { %3196 = vrsqrt.f32 %v1174_v36  ;;  %v1221_v54 = vmul.f32 %v3751_v38, %v1220_v44 }
 0x1e8   : > { %v1202_v39 = vmul.f32 0.5, %v1201_v37  ;;  %v1151_v40 = vpop.xlane.xlu1 %1150 }
 0x1e9   : > { %v1167_v41 = vmul.f32 %v1151_v40, %v3698_v49  ;;  %v1222_v2 = vmul.f32 0.5, %v1221_v54 }
 0x1ea   : > { %v1203_v42 = vsub.f32 1.5, %v1202_v39 }
 0x1eb   : > { %v3193_v43 = vpop.eup %3192  ;;  %v1173_v45 = vadd.f32 1e-05, %v1167_v41  ;;  %v1223_v15 = vsub.f32 1.5, %v1222_v2 }
 0x1ec   : > { %v3756_v46 = vpop.eup %3194  ;;  %v1204_v47 = vmul.f32 %v3189_v32, %v1203_v42  ;;  %v1210_v48 = vmul.f32 %v3193_v43, %v1176_v33  ;;  %vm1216_vm8 = vweird.f32 %v3193_v43 }
 0x1ed   : > { %v3197_v50 = vpop.eup %3196  ;;  %v1230_v51 = vmul.f32 %v3756_v46, %v3748_v34  ;;  %3198 = vrsqrt.f32 %v1173_v45  ;;  %vm1217_vm12 = vmor %vm1215_vm11, %vm1216_vm8  ;;  %vm1236_vm15 = vweird.f32 %v3756_v46  ;;  %vm1185_vm0 = vweird.f32 %v1173_v45 }
 0x1ee   : > { %v1211_v52 = vmul.f32 %v3193_v43, %v1210_v48  ;;  %v1190_v53 = vmul.f32 %v3197_v50, %v1174_v36  ;;  %v1208_v58 = vsel %vm1207_vm7, %v3189_v32, %v1204_v47  ;;  %vm1196_vm10 = vweird.f32 %v3197_v50  ;;  %vm3790_vm5 = vmor %vm1235_vm13, %vm1236_vm15  ;;  %v3817_v47 = vld [vmem:[%s4416_s19] ss:$0 sm:$0xff]  ;;  %s4422_s19 = scalar_lea.vmem %s4421_s21, %s3580_s4 }
 0x1ef   : > { %v1231_v57 = vmul.f32 %v3756_v46, %v1230_v51  ;;  %v1241_v1 = vmul.f32 %v1208_v58, %v3704_v56  ;;  %vm3770_vm14 = vmor %vm1195_vm9, %vm1196_vm10  ;;  %v1224_v30 = vmul.f32 %v3751_v38, %v1223_v15  ;;  %vm1441_vm8 = vcmask 130048  }
 0x1f0   : > { %v1212_v59 = vmul.f32 0.5, %v1211_v52  ;;  %v1191_v60 = vmul.f32 %v3197_v50, %v1190_v53  ;;  %vm1227_vm7 = vmor %vm1225_vm2, %vm1226_vm4  ;;  %vm1626_vm9 = vcmask 1043456   ;;  %vm1530_vm11 = vcmask 195584  }
 0x1f1   : > { %v1232_v62 = vmul.f32 0.5, %v1231_v57  ;;  %v1250_v17 = vmul.f32 %v3176_v3, %v1241_v1  ;;  %v3832_v1 = vld [vmem:[%s4417_s2] ss:$0 sm:$0xff] }
 0x1f2   : > { %v1213_v61 = vsub.f32 1.5, %v1212_v59  ;;  %v1192_v63 = vmul.f32 0.5, %v1191_v60 }
 0x1f3   : > { %v3199_v0 = vpop.eup %3198  ;;  %v1233_v12 = vsub.f32 1.5, %v1232_v62  ;;  %v1259_v28 = vadd.f32 %v3177_v18, %v1250_v17 }
 0x1f4   : > { %v1214_v8 = vmul.f32 %v3193_v43, %v1213_v61  ;;  %v1193_v9 = vsub.f32 1.5, %v1192_v63  ;;  %v1180_v10 = vmul.f32 %v3199_v0, %v1173_v45  ;;  %vm1186_vm1 = vweird.f32 %v3199_v0 }
 0x1f5   : > { %vm1187_vm6 = vmor %vm1185_vm0, %vm1186_vm1 }
 0x1f6   : > { %v1218_v56 = vsel %vm1217_vm12, %v3193_v43, %v1214_v8  ;;  %v1194_v13 = vmul.f32 %v3197_v50, %v1193_v9  ;;  %v1181_v14 = vmul.f32 %v3199_v0, %v1180_v10 }
 0x1f7   : > { %v1242_v16 = vmul.f32 %v1218_v56, %v3718_v5  ;;  %v1234_v5 = vmul.f32 %v3756_v46, %v1233_v12 }
 0x1f8   : > { %v1198_v20 = vsel %vm3770_vm14, %v3197_v50, %v1194_v13  ;;  %v1182_v21 = vmul.f32 0.5, %v1181_v14 }
 0x1f9   : > { %v1251_v22 = vmul.f32 %v3176_v3, %v1242_v16  ;;  %v1240_v27 = vmul.f32 %v1198_v20, %v3720_v6  ;;  %v1238_v32 = vsel %vm3790_vm5, %v3756_v46, %v1234_v5  ;;  %v1228_v6 = vsel %vm1227_vm7, %v3751_v38, %v1224_v30 }
 0x1fa   : > { %v1183_v26 = vsub.f32 1.5, %v1182_v21  ;;  %v1244_v36 = vmul.f32 %v1238_v32, %v3716_v4  ;;  %v1243_v39 = vmul.f32 %v1228_v6, %v3702_v55 }
 0x1fb   : > { %v1260_v29 = vadd.f32 %v3177_v18, %v1251_v22  ;;  %v1249_v35 = vmul.f32 %v3176_v3, %v1240_v27 }
 0x1fc   : > { %v1184_v31 = vmul.f32 %v3199_v0, %v1183_v26  ;;  %v1253_v43 = vmul.f32 %v3176_v3, %v1244_v36 }
 0x1fd   : > { %v1264_v23 = vpack.c.bf16 %v1260_v29, %v1259_v28  ;;  %v1258_v41 = vadd.f32 %v3177_v18, %v1249_v35 }
 0x1fe   : > { %v1188_v33 = vsel %vm1187_vm6, %v3199_v0, %v1184_v31  ;;  %v1262_v44 = vadd.f32 %v3177_v18, %v1253_v43 }
 0x1ff   : > { %v1239_v34 = vmul.f32 %v1188_v33, %v3722_v7  ;;  %2960 = vmatmul.msk.bf16.vlgmr.msra.gmra.mxu1 %vm1105_vm3, %v1264_v23  ;;  %v1252_v7 = vmul.f32 %v3176_v3, %v1243_v39 }
 0x201   : > { %v1248_v37 = vmul.f32 %v3176_v3, %v1239_v34  ;;  %v1261_v45 = vadd.f32 %v3177_v18, %v1252_v7 }
 0x203   : > { %v1257_v40 = vadd.f32 %v3177_v18, %v1248_v37  ;;  %v1265_v46 = vpack.c.bf16 %v1262_v44, %v1261_v45  ;;  %v3179_v18 = vld [vmem:[%s4418_s13] ss:$0 sm:$0xff] }
 0x205   : > { %v1263_v42 = vpack.c.bf16 %v1258_v41, %v1257_v40 }
 0x207   : > { %2959 = vmatmul.msk.bf16.vlgmr.msra.gmra.mxu0 %vm1105_vm3, %v1263_v42  ;;  %2981 = vmatmul.msk.bf16.vlgmr.msra.gmra.mxu2 %vm1105_vm3, %v1263_v42 }
 0x20f   : > { %2961 = vmatmul.msk.bf16.gmra.mxu1 %vm1105_vm3, %v1265_v46 }
 0x217   : > { %2982 = vmatmul.msk.bf16.gmra.mxu2 %vm1105_vm3, %v1264_v23 }
 0x21f   : > { %2970 = vmatmul.msk.bf16.vlgmr.msrb.gmra.mxu1 %vm1105_vm3, %v1263_v42 }
 0x227   : > { %2983 = vmatmul.msk.bf16.gmra.mxu2 %vm1105_vm3, %v1265_v46 }
 0x22f   : > { %2971 = vmatmul.msk.bf16.gmra.mxu1 %vm1105_vm3, %v1264_v23 }
 0x23f   : > { %2972 = vmatmul.msk.bf16.gmra.mxu1 %vm1105_vm3, %v1265_v46 }
 0x27c   : > { %v1309_v55 = vpop.f32.mrf.mxu1 }
 0x27d   : > { %v1310_v39 = vadd.f32 %v3817_v47, %v1309_v55 }
 0x284   : > { %v1304_v4 = vpop.f32.mrf.mxu0  ;;  %v1311_v38 = vpop.f32.mrf.mxu1 }
 0x285   : > { %v1305_v48 = vadd.f32 %v3817_v47, %v1304_v4  ;;  %v1312_v12 = vadd.f32 %v3817_v47, %v1311_v38  ;;  %v1409_v4 = vpack.c.bf16 %v1310_v39, %v1310_v39 }
 0x287   : > { %v1407_v53 = vpack.c.bf16 %v1305_v48, %v1305_v48  ;;  %v1410_v20 = vpack.c.bf16 %v1312_v12, %v1312_v12 }
 0x289   : > { %v1428_v58 = vunpack.c.l.b16 %v1407_v53  ;;  %v1475_v25 = vunpack.c.l.b16 %v1410_v20 }
 0x28a   : > { %v1392_v50 = vpop.f32.mrf.mxu2 }
 0x28b   : > { %v1393_v40 = vadd.f32 %v3179_v18, %v1392_v50 }
 0x28c   : > { %v1306_v51 = vpop.f32.mrf.mxu0  ;;  %v1314_v52 = vpop.f32.mrf.mxu1 }
 0x28d   : > { %v1307_v54 = vadd.f32 %v3817_v47, %v1306_v51  ;;  %v1315_v11 = vadd.f32 %v3817_v47, %v1314_v52  ;;  %v1419_v38 = vpack.c.bf16 %v1393_v40, %v1393_v40 }
 0x28f   : > { %v1408_v57 = vpack.c.bf16 %v1307_v54, %v1307_v54  ;;  %v1411_v16 = vpack.c.bf16 %v1315_v11, %v1315_v11 }
 0x291   : > { %v1429_v59 = vunpack.c.l.b16 %v1408_v57  ;;  %v1476_v24 = vunpack.c.l.b16 %v1411_v16 }
 0x292   : > { %v1394_v60 = vpop.f32.mrf.mxu2 }
 0x293   : > { %v3821_v61 = vpack.c.b16 %v1429_v59, %v1428_v58  ;;  %v3845_v30 = vpack.c.b16 %v1476_v24, %v1475_v25  ;;  %v1395_v34 = vadd.f32 %v3179_v18, %v1394_v60  ;;  %v1430_v59 = vunpack.c.l.b16 %v1409_v4 }
 0x294   : > { %v3823_v62 = vpop.f32.mrf.mxu1  ;;  %v1614_v60 = vunpack.c.l.b16 %v1419_v38 }
 0x295   : > { %1692 = vrot.lane.b32.xlu2 %v3821_v61, %s3379_s28  ;;  %v1420_v43 = vpack.c.bf16 %v1395_v34, %v1395_v34 }
 0x297   : > { %v1615_v55 = vunpack.c.l.b16 %v1420_v43 }
 0x29a   : > { %v1397_v63 = vpop.f32.mrf.mxu2 }
 0x29b   : > { %v1398_v22 = vadd.f32 %v3179_v18, %v1397_v63  ;;  %v1317_v63 = vadd.f32 %v3817_v47, %v3823_v62 }
 0x29c   : > { %v1348_v0 = vpop.f32.mrf.mxu1 }
 0x29d   : > { %v1349_v2 = vadd.f32 %v3832_v1, %v1348_v0  ;;  %v1421_v27 = vpack.c.bf16 %v1398_v22, %v1398_v22 }
 0x29f   : > { %v1413_v9 = vpack.c.bf16 %v1349_v2, %v1349_v2  ;;  %v1616_v36 = vunpack.c.l.b16 %v1421_v27  ;;  %v3868_v2 = vpack.c.b16 %v1615_v55, %v1614_v60 }
 0x2a1   : > { %v1436_v13 = vunpack.c.l.b16 %v1413_v9  ;;  %v3855_v45 = vpack.c.b16 %v1616_v36, %v1616_v36  ;;  %v1432_v9 = vpack.c.b16 %v1430_v59, %v1430_v59 }
 0x2a2   : > { %v1399_v3 = vpop.f32.mrf.mxu2 }
 0x2a3   : > { %v1400_v32 = vadd.f32 %v3179_v18, %v1399_v3  ;;  %v1628_v58 = vsel %vm1626_vm9, %v3855_v45, 0 }
 0x2a4   : > { %v1350_v8 = vpop.f32.mrf.mxu1 }
 0x2a5   : > { %v1351_v10 = vadd.f32 %v3832_v1, %v1350_v8  ;;  %v1422_v42 = vpack.c.bf16 %v1400_v32, %v1400_v32 }
 0x2a7   : > { %v1414_v56 = vpack.c.bf16 %v1351_v10, %v1351_v10  ;;  %v1659_v51 = vunpack.c.l.b16 %v1422_v42  ;;  %v1412_v10 = vpack.c.bf16 %v1317_v63, %v1317_v63 }
 0x2a9   : > { %v1437_v14 = vunpack.c.l.b16 %v1414_v56  ;;  %v1477_v47 = vunpack.c.l.b16 %v1412_v10 }
 0x2aa   : > { %v1402_v15 = vpop.f32.mrf.mxu2 }
 0x2ab   : > { %v1439_v17 = vpack.c.b16 %v1437_v14, %v1436_v13  ;;  %v1403_v28 = vadd.f32 %v3179_v18, %v1402_v15  ;;  %v1479_v14 = vpack.c.b16 %v1477_v47, %v1477_v47 }
 0x2ac   : > { %v1353_v19 = vpop.f32.mrf.mxu1 }
 0x2ad   : > { %v1354_v21 = vadd.f32 %v3832_v1, %v1353_v19  ;;  %1696 = vrot.lane.b32.xlu1 %v1439_v17, %s3379_s28  ;;  %v1423_v37 = vpack.c.bf16 %v1403_v28, %v1403_v28  ;;  %v1449_v54 = vsel %vm1441_vm8, %v1439_v17, 0 }
 0x2af   : > { %v1415_v5 = vpack.c.bf16 %v1354_v21, %v1354_v21  ;;  %v1660_v46 = vunpack.c.l.b16 %v1423_v37  ;;  %v1093_v21 = vlaneseq }
 0x2b1   : > { %v1438_v26 = vunpack.c.l.b16 %v1415_v5  ;;  %v3861_v57 = vpack.c.b16 %v1660_v46, %v1659_v51  ;;  %v1094_v22 = vand.u32 127, %v1093_v21 }
 0x2b2   : > { %v1404_v29 = vpop.f32.mrf.mxu2 }
 0x2b3   : > { %v1440_v31 = vpack.c.b16 %v1438_v26, %v1438_v26  ;;  %v1405_v23 = vadd.f32 %v3179_v18, %v1404_v29  ;;  %vm1095_vm10 = vcmp.lt.s32.totalorder %v1094_v22, 17  ;;  %v3380_v26 = vmov -1e+30  }
 0x2b4   : > { %v1355_v33 = vpop.f32.mrf.mxu1  ;;  %v3888_v27 = vsel %vm1095_vm10, 0.0, %v3380_v26 }
 0x2b5   : > { %v1424_v35 = vpack.c.bf16 %v1405_v23, %v1405_v23  ;;  %1698 = vrot.lane.b32.xlu0 %v1440_v31, %s3379_s28  ;;  %1730 = vrot.lane.b32.xlu1 %v3845_v30, %s3379_s28  ;;  %v1452_v6 = vsel %vm1441_vm8, %v1440_v31, 0  ;;  %v1356_v44 = vadd.f32 %v3832_v1, %v1355_v33 }
 0x2b6   : > { %1460 = vmatpush.bf16.xpose.msrb.mxu0 %v1452_v6  ;;  %3083 = vmatpush.bf16.xpose.msra.mxu3 %v1452_v6 }
 0x2b7   : > { %v1661_v41 = vunpack.c.l.b16 %v1424_v35  ;;  %v1416_v50 = vpack.c.bf16 %v1356_v44, %v1356_v44 }
 0x2b9   : > { %v3852_v7 = vpack.c.b16 %v1661_v41, %v1661_v41  ;;  %v1483_v3 = vunpack.c.l.b16 %v1416_v50 }
 0x2bb   : > { %v1672_v48 = vsel %vm1626_vm9, %v3852_v7, 0 }
 0x2bc   : > { %v1358_v52 = vpop.f32.mrf.mxu1  ;;  %1680 = vmatpush.bf16.msra.mxu1 %v1672_v48 }
 0x2bd   : > { %v1359_v53 = vadd.f32 %v3832_v1, %v1358_v52 }
 0x2be   : > { %1461 = vmatpush.bf16.xpose.msrb.mxu0 %v1449_v54  ;;  %3084 = vmatpush.bf16.xpose.msra.mxu3 %v1449_v54 }
 0x2bf   : > { %v1417_v0 = vpack.c.bf16 %v1359_v53, %v1359_v53 }
 0x2c0   : > { %1681 = vmatpush.bf16.msra.mxu1 %v3861_v57 }
 0x2c1   : > { %v1484_v8 = vunpack.c.l.b16 %v1417_v0 }
 0x2c3   : > { %v1486_v11 = vpack.c.b16 %v1484_v8, %v1483_v3 }
 0x2c4   : > { %v1360_v56 = vpop.f32.mrf.mxu1 }
 0x2c5   : > { %v1361_v12 = vadd.f32 %v3832_v1, %v1360_v56  ;;  %2985 = vmatmul.msk.bf16.vlgmr.msra.gmra.mxu3 %vm1441_vm8, %v1432_v9  ;;  %1734 = vrot.lane.b32.xlu2 %v1486_v11, %s3379_s28  ;;  %v1495_v1 = vsel %vm1441_vm8, %v1486_v11, 0 }
 0x2c6   : > { %1636 = vmatpush.bf16.msra.mxu0 %v1628_v58 }
 0x2c7   : > { %2984 = vmatmul.msk.bf16.vlgmr.msrb.gmra.mxu0 %vm1441_vm8, %v3821_v61  ;;  %v1418_v62 = vpack.c.bf16 %v1361_v12, %v1361_v12 }
 0x2c9   : > { %v1485_v13 = vunpack.c.l.b16 %v1418_v62 }
 0x2ca   : > { %1637 = vmatpush.bf16.msra.mxu0 %v3868_v2 }
 0x2cb   : > { %v1487_v15 = vpack.c.b16 %v1485_v13, %v1485_v13 }
 0x2cd   : > { %1736 = vrot.lane.b32.xlu0 %v1487_v15, %s3379_s28  ;;  %1732 = vrot.lane.b32.xlu2 %v1479_v14, %s3379_s28  ;;  %v1498_v16 = vsel %vm1441_vm8, %v1487_v15, 0 }
 0x2ce   : > { %1506 = vmatpush.bf16.xpose.msrb.mxu3 %v1498_v16 }
 0x2d5   : > { %1694 = vrot.lane.b32.xlu0 %v1432_v9, %s3379_s28 }
 0x2d6   : > { %1507 = vmatpush.bf16.xpose.msrb.mxu3 %v1495_v1 }
 0x2dd   : > { %2986 = vmatmul.msk.bf16.vlgmr.msrb.gmra.mxu3 %vm1441_vm8, %v3845_v30 }
 0x2ed   : > { %2987 = vmatmul.msk.bf16.gmra.mxu3 %vm1441_vm8, %v1479_v14 }
 0x2ef   : > { %v1693_v20 = vpop.permute.xlu2 %1692 }
 0x31f   : > { %v1697_v18 = vpop.permute.xlu1 %1696  ;;  %v1735_v29 = vpop.permute.xlu2 %1734 }
 0x320   : > { %v1707_v19 = vsel %vm1441_vm8, %v1697_v18, 0  ;;  %v1745_v23 = vsel %vm1441_vm8, %v1735_v29, 0 }
 0x327   : > { %v1699_v61 = vpop.permute.xlu0 %1698  ;;  %v1731_v40 = vpop.permute.xlu1 %1730 }
 0x328   : > { %v1710_v17 = vsel %vm1441_vm8, %v1699_v61, 0  ;;  %v1733_v43 = vpop.permute.xlu2 %1732 }
 0x329   : > { %1718 = vmatpush.bf16.xpose.msrb.mxu2 %v1710_v17 }
 0x331   : > { %1719 = vmatpush.bf16.xpose.msrb.mxu2 %v1707_v19 }
 0x338   : > { %2992 = vmatmul.msk.bf16.vlgmr.msrb.gmra.mxu2 %vm1441_vm8, %v1693_v20 }
 0x33f   : > { %v1737_v24 = vpop.permute.xlu0 %1736 }
 0x340   : > { %v1748_v5 = vsel %vm1441_vm8, %v1737_v24, 0 }
 0x341   : > { %1756 = vmatpush.bf16.xpose.msra.mxu3 %v1748_v5 }
 0x344   : > { %v1463_v25 = vpop.f32.mrf.mxu0 }
 0x345   : > { %v1518_v28 = vmul.f32 0.25, %v1463_v25 }
 0x347   : > { %v1524_v30 = vadd.f32 %v1518_v28, %v3888_v27  ;;  %v1695_v31 = vpop.permute.xlu0 %1694 }
 0x348   : > { %v1468_v32 = vpop.f32.mrf.mxu3  ;;  %2993 = vmatmul.msk.bf16.gmra.mxu2 %vm1441_vm8, %v1695_v31 }
 0x349   : > { %v1531_v33 = vsel %vm1530_vm11, %v1524_v30, -inf  ;;  %v1520_v34 = vmul.f32 0.25, %v1468_v32  ;;  %1757 = vmatpush.bf16.xpose.msra.mxu3 %v1745_v23 }
 0x34a   : > { %1532 = vmax.xlane.f32.xlu1 %v1531_v33 }
 0x34b   : > { %v1526_v6 = vadd.f32 %v1520_v34, %v3888_v27 }
 0x34c   : > { %v1465_v35 = vpop.f32.mrf.mxu0 }
 0x34d   : > { %v1519_v36 = vmul.f32 0.25, %v1465_v35  ;;  %v1537_v37 = vsel %vm1530_vm11, %v1526_v6, -inf }
 0x34e   : > { %1538 = vmax.xlane.f32.xlu2 %v1537_v37 }
 0x34f   : > { %v1525_v39 = vadd.f32 %v1519_v36, %v3888_v27 }
 0x350   : > { %v1470_v41 = vpop.f32.mrf.mxu3  ;;  %2994 = vmatmul.msk.bf16.vlgmr.msra.gmra.mxu3 %vm1441_vm8, %v1731_v40 }
 0x351   : > { %v1534_v42 = vsel %vm1530_vm11, %v1525_v39, -inf }
 0x352   : > { %1535 = vmax.xlane.f32.xlu0 %v1534_v42 }
 0x360   : > { %v1509_v44 = vpop.f32.mrf.mxu3  ;;  %2995 = vmatmul.msk.bf16.gmra.mxu3 %vm1441_vm8, %v1733_v43 }
 0x361   : > { %v1521_v46 = vmul.f32 0.25, %v1509_v44 }
 0x363   : > { %v3901_v4 = vadd.f32 %v1521_v46, %v3888_v27 }
 0x365   : > { %v1540_v38 = vsel %vm1530_vm11, %v3901_v4, -inf }
 0x366   : > { %1541 = vmax.xlane.f32.xlu1 %v1540_v38 }
 0x368   : > { %v1511_v48 = vpop.f32.mrf.mxu3 }
 0x369   : > { %v1522_v51 = vmul.f32 0.25, %v1511_v48 }
 0x36b   : > { %v1528_v52 = vadd.f32 %v1522_v51, %v3888_v27 }
 0x36d   : > { %v1543_v55 = vsel %vm1530_vm11, %v1528_v52, -inf }
 0x36e   : > { %1544 = vmax.xlane.f32.xlu0 %v1543_v55 }
 0x370   : > { %v1514_v50 = vpop.f32.mrf.mxu3 }
 0x371   : > { %v1523_v53 = vmul.f32 0.25, %v1514_v50 }
 0x373   : > { %v1529_v54 = vadd.f32 %v1523_v53, %v3888_v27 }
 0x375   : > { %v1546_v58 = vsel %vm1530_vm11, %v1529_v54, -inf }
 0x376   : > { %1547 = vmax.xlane.f32.xlu0 %v1546_v58 }
 0x378   : > { %v1516_v59 = vpop.f32.mrf.mxu3 }
 0x3bb   : > { %v1721_v60 = vpop.f32.mrf.mxu2 }
 0x3bc   : > { %v1768_v63 = vmul.f32 0.25, %v1721_v60 }
 0x3bd   : > { %v1533_v0 = vpop.xlane.xlu1 %1532 }
 0x3be   : > { %v1549_v3 = vsub.f32 %v1524_v30, %v1533_v0  ;;  %v3910_v8 = vadd.f32 %v1768_v63, %v3888_v27 }
 0x3c0   : > { %v1555_v9 = vmul.f32 1.442695, %v1549_v3  ;;  %v1780_v10 = vsel %vm1530_vm11, %v3910_v8, -inf }
 0x3c1   : > { %1781 = vmax.xlane.f32.xlu2 %v1780_v10  ;;  %v1539_v56 = vpop.xlane.xlu2 %1538 }
 0x3c2   : > { %3200 = vpow2.f32 %v1555_v9  ;;  %v1551_v15 = vsub.f32 %v1526_v6, %v1539_v56 }
 0x3c3   : > { %v1723_v11 = vpop.f32.mrf.mxu2 }
 0x3c4   : > { %v1769_v12 = vmul.f32 0.25, %v1723_v11  ;;  %v1559_v17 = vmul.f32 1.442695, %v1551_v15 }
 0x3c5   : > { %v1536_v47 = vpop.xlane.xlu0 %1535 }
 0x3c6   : > { %v1550_v62 = vsub.f32 %v1525_v39, %v1536_v47  ;;  %v3915_v13 = vadd.f32 %v1769_v12, %v3888_v27 }
 0x3c8   : > { %v3917_v14 = vpop.eup %3200  ;;  %v1557_v16 = vmul.f32 1.442695, %v1550_v62  ;;  %v1783_v1 = vsel %vm1530_vm11, %v3915_v13, -inf }
 0x3c9   : > { %v1567_v61 = vsel %vm1530_vm11, %v3917_v14, 0.0  ;;  %1784 = vmax.xlane.f32.xlu1 %v1783_v1 }
 0x3ca   : > { %3202 = vpow2.f32 %v1557_v16  ;;  %1568 = vadd.xlane.f32.xlu2 %v1567_v61 }
 0x3cb   : > { %v1726_v18 = vpop.f32.mrf.mxu2  ;;  %3204 = vpow2.f32 %v1559_v17 }
 0x3cc   : > { %v1770_v19 = vmul.f32 0.25, %v1726_v18 }
 0x3ce   : > { %v3924_v20 = vadd.f32 %v1770_v19, %v3888_v27 }
 0x3d0   : > { %v3926_v21 = vpop.eup %3202  ;;  %v1786_v22 = vsel %vm1530_vm11, %v3924_v20, -inf }
 0x3d1   : > { %v1570_v24 = vsel %vm1530_vm11, %v3926_v21, 0.0  ;;  %1787 = vmax.xlane.f32.xlu0 %v1786_v22  ;;  %v3932_v28 = vpop.eup %3204 }
 0x3d2   : > { %1571 = vadd.xlane.f32.xlu1 %v1570_v24  ;;  %v1573_v30 = vsel %vm1530_vm11, %v3932_v28, 0.0 }
 0x3d3   : > { %v1728_v5 = vpop.f32.mrf.mxu2  ;;  %v1759_v25 = vpop.f32.mrf.mxu3 }
 0x3d4   : > { %v1771_v26 = vmul.f32 0.25, %v1759_v25 }
 0x3d6   : > { %v3935_v29 = vadd.f32 %v1771_v26, %v3888_v27 }
 0x3d8   : > { %v1789_v31 = vsel %vm1530_vm11, %v3935_v29, -inf }
 0x3d9   : > { %1574 = vadd.xlane.f32.xlu0 %v1573_v30  ;;  %1790 = vmax.xlane.f32.xlu2 %v1789_v31  ;;  %v1542_v48 = vpop.xlane.xlu1 %1541 }
 0x3db   : > { %v1761_v23 = vpop.f32.mrf.mxu3 }
 0x3dc   : > { %v1772_v32 = vmul.f32 0.25, %v1761_v23 }
 0x3de   : > { %v3942_v33 = vadd.f32 %v1772_v32, %v3888_v27 }
 0x3e0   : > { %v1792_v34 = vsel %vm1530_vm11, %v3942_v33, -inf }
 0x3e1   : > { %v1545_v35 = vpop.xlane.xlu0 %1544  ;;  %1793 = vmax.xlane.f32.xlu1 %v1792_v34 }
 0x3e2   : > { %v1553_v6 = vsub.f32 %v1528_v52, %v1545_v35  ;;  %v1552_v52 = vsub.f32 %v3901_v4, %v1542_v48 }
 0x3e3   : > { %v1764_v36 = vpop.f32.mrf.mxu3 }
 0x3e4   : > { %v1563_v37 = vmul.f32 1.442695, %v1553_v6  ;;  %v1773_v51 = vmul.f32 0.25, %v1764_v36  ;;  %v1561_v50 = vmul.f32 1.442695, %v1552_v52 }
 0x3e6   : > { %3206 = vpow2.f32 %v1563_v37  ;;  %v3960_v55 = vadd.f32 %v1773_v51, %v3888_v27 }
 0x3e9   : > { %v1548_v39 = vpop.xlane.xlu0 %1547 }
 0x3ea   : > { %v1554_v40 = vsub.f32 %v1529_v54, %v1548_v39 }
 0x3eb   : > { %v1766_v41 = vpop.f32.mrf.mxu3 }
 0x3ec   : > { %v3946_v42 = vpop.eup %3206  ;;  %v1565_v43 = vmul.f32 1.442695, %v1554_v40 }
 0x3ed   : > { %v1579_v44 = vsel %vm1530_vm11, %v3946_v42, 0.0 }
 0x3ee   : > { %3208 = vpow2.f32 %v1565_v43  ;;  %1580 = vadd.xlane.f32.xlu0 %v1579_v44 }
 0x3ef   : > { %3210 = vpow2.f32 %v1561_v50 }
 0x3f1   : > { %1862 = vrot.lane.b32.xlu2 %v3855_v45, %s3379_s28  ;;  %v1795_v45 = vsel %vm1530_vm11, %v3960_v55, -inf }
 0x3f4   : > { %v3952_v46 = vpop.eup %3208 }
 0x3f5   : > { %v1582_v38 = vsel %vm1530_vm11, %v3952_v46, 0.0  ;;  %v3964_v53 = vpop.eup %3210 }
 0x3f6   : > { %1583 = vadd.xlane.f32.xlu0 %v1582_v38  ;;  %v1576_v54 = vsel %vm1530_vm11, %v3964_v53, 0.0 }
 0x3fa   : > { %1860 = vrot.lane.b32.xlu1 %v3868_v2, %s3379_s28 }
 0x41a   : > { %1796 = vmax.xlane.f32.xlu2 %v1795_v45 }
 0x424   : > { %1577 = vadd.xlane.f32.xlu1 %v1576_v54 }
 0x434   : > { %v1782_v2 = vpop.xlane.xlu2 %1781 }
 0x435   : > { %v1798_v58 = vsub.f32 %v3910_v8, %v1782_v2 }
 0x437   : > { %v1804_v59 = vmul.f32 1.442695, %v1798_v58 }
 0x439   : > { %3212 = vpow2.f32 %v1804_v59 }
 0x43c   : > { %v1785_v27 = vpop.xlane.xlu1 %1784 }
 0x43d   : > { %v1569_v4 = vpop.xlane.xlu2 %1568  ;;  %v1799_v60 = vsub.f32 %v3915_v13, %v1785_v27 }
 0x43e   : > { %3214 = vrcp.f32 %v1569_v4 }
 0x43f   : > { %v3970_v63 = vpop.eup %3212  ;;  %v1806_v0 = vmul.f32 1.442695, %v1799_v60 }
 0x440   : > { %v1816_v3 = vsel %vm1530_vm11, %v3970_v63, 0.0 }
 0x441   : > { %3216 = vpow2.f32 %v1806_v0  ;;  %1817 = vadd.xlane.f32.xlu2 %v1816_v3 }
 0x444   : > { %v1788_v9 = vpop.xlane.xlu0 %1787  ;;  %v3215_v11 = vpop.eup %3214 }
 0x445   : > { %v1572_v10 = vpop.xlane.xlu1 %1571  ;;  %v1800_v8 = vsub.f32 %v3924_v20, %v1788_v9  ;;  %v1591_v47 = vmul.f32 %v3215_v11, %v3917_v14 }
 0x446   : > { %3218 = vrcp.f32 %v1572_v10 }
 0x447   : > { %v3975_v56 = vpop.eup %3216  ;;  %v1808_v12 = vmul.f32 1.442695, %v1800_v8  ;;  %v1597_v15 = vpack.c.bf16 %v1591_v47, %v1591_v47 }
 0x448   : > { %v1819_v62 = vsel %vm1530_vm11, %v3975_v56, 0.0 }
 0x449   : > { %3220 = vpow2.f32 %v1808_v12  ;;  %1820 = vadd.xlane.f32.xlu1 %v1819_v62  ;;  %v1606_v22 = vunpack.c.l.b16 %v1597_v15 }
 0x44c   : > { %v3219_v13 = vpop.eup %3218  ;;  %v1575_v1 = vpop.xlane.xlu0 %1574 }
 0x44d   : > { %v1592_v16 = vmul.f32 %v3219_v13, %v3926_v21  ;;  %v1791_v61 = vpop.xlane.xlu2 %1790  ;;  %3222 = vrcp.f32 %v1575_v1 }
 0x44e   : > { %v1801_v17 = vsub.f32 %v3935_v29, %v1791_v61 }
 0x44f   : > { %v1598_v18 = vpack.c.bf16 %v1592_v16, %v1592_v16  ;;  %v3982_v19 = vpop.eup %3220 }
 0x450   : > { %v1810_v20 = vmul.f32 1.442695, %v1801_v17  ;;  %v1822_v24 = vsel %vm1530_vm11, %v3982_v19, 0.0 }
 0x451   : > { %v1607_v14 = vunpack.c.l.b16 %v1598_v18  ;;  %1823 = vadd.xlane.f32.xlu0 %v1822_v24 }
 0x452   : > { %3224 = vpow2.f32 %v1810_v20 }
 0x453   : > { %v1609_v5 = vpack.c.b16 %v1607_v14, %v1606_v22  ;;  %v3223_v25 = vpop.eup %3222 }
 0x454   : > { %v1794_v21 = vpop.xlane.xlu1 %1793  ;;  %v1593_v31 = vmul.f32 %v3223_v25, %v3932_v28 }
 0x455   : > { %v1863_v26 = vpop.permute.xlu2 %1862  ;;  %2988 = vmatmul.msk.bf16.vlgmr.msra.gmra.mxu0 %vm1530_vm11, %v1609_v5  ;;  %v1802_v29 = vsub.f32 %v3942_v33, %v1794_v21 }
 0x456   : > { %v1872_v30 = vsel %vm1626_vm9, %v1863_v26, 0  ;;  %v1599_v35 = vpack.c.bf16 %v1593_v31, %v1593_v31 }
 0x457   : > { %1880 = vmatpush.bf16.msrb.mxu0 %v1872_v30  ;;  %v1812_v32 = vmul.f32 1.442695, %v1802_v29 }
 0x458   : > { %v3990_v23 = vpop.eup %3224  ;;  %v1608_v6 = vunpack.c.l.b16 %v1599_v35 }
 0x459   : > { %v1825_v34 = vsel %vm1530_vm11, %v3990_v23, 0.0  ;;  %3226 = vpow2.f32 %v1812_v32  ;;  %1902 = vrot.lane.b32.xlu2 %v3852_v7, %s3379_s28 }
 0x45a   : > { %1826 = vadd.xlane.f32.xlu0 %v1825_v34  ;;  %v1610_v28 = vpack.c.b16 %v1608_v6, %v1608_v6 }
 0x45f   : > { %v3996_v36 = vpop.eup %3226 }
 0x460   : > { %v1828_v33 = vsel %vm1530_vm11, %v3996_v36, 0.0 }
 0x461   : > { %v1581_v40 = vpop.xlane.xlu0 %1580 }
 0x462   : > { %1829 = vadd.xlane.f32.xlu0 %v1828_v33  ;;  %1900 = vrot.lane.b32.xlu1 %v3861_v57, %s3379_s28  ;;  %3228 = vrcp.f32 %v1581_v40 }
 0x465   : > { %2989 = vmatmul.msk.bf16.gmra.mxu0 %vm1530_vm11, %v1610_v28 }
 0x468   : > { %v3229_v43 = vpop.eup %3228 }
 0x469   : > { %v1595_v48 = vmul.f32 %v3229_v43, %v3946_v42  ;;  %v1584_v51 = vpop.xlane.xlu0 %1583 }
 0x46b   : > { %v1601_v50 = vpack.c.bf16 %v1595_v48, %v1595_v48 }
 0x46c   : > { %v1861_v37 = vpop.permute.xlu1 %1860 }
 0x46d   : > { %1881 = vmatpush.bf16.msrb.mxu0 %v1861_v37  ;;  %v1652_v54 = vunpack.c.l.b16 %v1601_v50  ;;  %v3071_v50 = vld [vmem:[%s3624_s8 + $0x8] sm:$0xff] }
 0x46e   : > { %1996 = vmatpush.bf16.msra.mxu2 %v3071_v50 }
 0x48d   : > { %v1797_v39 = vpop.xlane.xlu2 %1796 }
 0x48e   : > { %v1803_v7 = vsub.f32 %v3960_v55, %v1797_v39 }
 0x490   : > { %v1814_v41 = vmul.f32 1.442695, %v1803_v7 }
 0x492   : > { %3230 = vpow2.f32 %v1814_v41 }
 0x497   : > { %v1578_v44 = vpop.xlane.xlu1 %1577 }
 0x498   : > { %v4004_v38 = vpop.eup %3230  ;;  %3232 = vrcp.f32 %v1578_v44 }
 0x499   : > { %v1831_v57 = vsel %vm1530_vm11, %v4004_v38, 0.0  ;;  %3234 = vrcp.f32 %v1584_v51 }
 0x49a   : > { %1832 = vadd.xlane.f32.xlu0 %v1831_v57 }
 0x49e   : > { %v3233_v52 = vpop.eup %3232 }
 0x49f   : > { %v1594_v45 = vmul.f32 %v3233_v52, %v3964_v53  ;;  %v3235_v59 = vpop.eup %3234 }
 0x4a0   : > { %v1596_v4 = vmul.f32 %v3235_v59, %v3952_v46 }
 0x4a1   : > { %v1600_v55 = vpack.c.bf16 %v1594_v45, %v1594_v45  ;;  %v3070_v45 = vld [vmem:[%s3624_s8] sm:$0xff] }
 0x4a2   : > { %v1602_v27 = vpack.c.bf16 %v1596_v4, %v1596_v4  ;;  %1997 = vmatpush.bf16.msra.mxu2 %v3070_v45 }
 0x4a3   : > { %v1651_v2 = vunpack.c.l.b16 %v1600_v55 }
 0x4a4   : > { %v1653_v60 = vunpack.c.l.b16 %v1602_v27 }
 0x4a5   : > { %v1654_v58 = vpack.c.b16 %v1652_v54, %v1651_v2 }
 0x4a6   : > { %v1655_v3 = vpack.c.b16 %v1653_v60, %v1653_v60 }
 0x4a7   : > { %2990 = vmatmul.msk.bf16.vlgmr.msra.gmra.mxu1 %vm1530_vm11, %v1654_v58 }
 0x4b4   : > { %v1818_v0 = vpop.xlane.xlu2 %1817 }
 0x4b5   : > { %3236 = vrcp.f32 %v1818_v0 }
 0x4b7   : > { %2991 = vmatmul.msk.bf16.gmra.mxu1 %vm1530_vm11, %v1655_v3 }
 0x4bb   : > { %v3237_v53 = vpop.eup %3236 }
 0x4bc   : > { %v1903_v42 = vpop.permute.xlu2 %1902  ;;  %v1821_v9 = vpop.xlane.xlu1 %1820  ;;  %v1840_v11 = vmul.f32 %v3237_v53, %v3970_v63 }
 0x4bd   : > { %v1912_v10 = vsel %vm1626_vm9, %v1903_v42, 0  ;;  %3238 = vrcp.f32 %v1821_v9 }
 0x4be   : > { %1920 = vmatpush.bf16.msrb.mxu1 %v1912_v10  ;;  %v1846_v12 = vpack.c.bf16 %v1840_v11, %v1840_v11 }
 0x4c0   : > { %v1855_v13 = vunpack.c.l.b16 %v1846_v12 }
 0x4c3   : > { %v3239_v8 = vpop.eup %3238 }
 0x4c4   : > { %v1841_v46 = vmul.f32 %v3239_v8, %v3975_v56  ;;  %v1824_v47 = vpop.xlane.xlu0 %1823 }
 0x4c5   : > { %3240 = vrcp.f32 %v1824_v47 }
 0x4c6   : > { %v1847_v62 = vpack.c.bf16 %v1841_v46, %v1841_v46 }
 0x4c8   : > { %v1856_v15 = vunpack.c.l.b16 %v1847_v62 }
 0x4ca   : > { %v1858_v16 = vpack.c.b16 %v1856_v15, %v1855_v13 }
 0x4cb   : > { %v3241_v1 = vpop.eup %3240 }
 0x4cc   : > { %2996 = vmatmul.msk.bf16.vlgmr.msrb.gmra.mxu0 %vm1530_vm11, %v1858_v16  ;;  %v1842_v17 = vmul.f32 %v3241_v1, %v3982_v19  ;;  %v3181_v16 = vld [vmem:[%s4420_s30] ss:$0 sm:$0xff] }
 0x4cd   : > { %v1827_v61 = vpop.xlane.xlu0 %1826 }
 0x4ce   : > { %3242 = vrcp.f32 %v1827_v61  ;;  %v1848_v20 = vpack.c.bf16 %v1842_v17, %v1842_v17  ;;  %v3272_v61 = vld [vmem:[#allocation2] sm:$0xff] }
 0x4d0   : > { %v1857_v56 = vunpack.c.l.b16 %v1848_v20 }
 0x4d2   : > { %v1639_v18 = vpop.f32.mrf.mxu0  ;;  %v1859_v25 = vpack.c.b16 %v1857_v56, %v1857_v56 }
 0x4d4   : > { %v1901_v22 = vpop.permute.xlu1 %1900  ;;  %v3243_v14 = vpop.eup %3242 }
 0x4d5   : > { %v1830_v63 = vpop.xlane.xlu0 %1829  ;;  %1921 = vmatpush.bf16.msrb.mxu1 %v1901_v22  ;;  %v1843_v24 = vmul.f32 %v3243_v14, %v3990_v23  ;;  %v3273_v22 = vld [vmem:[#allocation2 + $0x8] sm:$0xff] }
 0x4d6   : > { %3244 = vrcp.f32 %v1830_v63 }
 0x4d7   : > { %v1849_v21 = vpack.c.bf16 %v1843_v24, %v1843_v24 }
 0x4d9   : > { %v1895_v29 = vunpack.c.l.b16 %v1849_v21 }
 0x4da   : > { %v1641_v5 = vpop.f32.mrf.mxu0 }
 0x4dc   : > { %v3245_v26 = vpop.eup %3244  ;;  %2997 = vmatmul.msk.bf16.gmra.mxu0 %vm1530_vm11, %v1859_v25  ;;  %v3274_v25 = vld [vmem:[#allocation2 + $0x10] sm:$0xff] }
 0x4dd   : > { %v1844_v30 = vmul.f32 %v3245_v26, %v3996_v36 }
 0x4df   : > { %v1850_v19 = vpack.c.bf16 %v1844_v30, %v1844_v30 }
 0x4e1   : > { %v1896_v31 = vunpack.c.l.b16 %v1850_v19 }
 0x4e2   : > { %v1644_v32 = vpop.f32.mrf.mxu0 }
 0x4e3   : > { %v1898_v34 = vpack.c.b16 %v1896_v31, %v1895_v29  ;;  %v3275_v29 = vld [vmem:[#allocation2 + $0x18] sm:$0xff] }
 0x4e5   : > { %2998 = vmatmul.msk.bf16.vlgmr.msrb.gmra.mxu1 %vm1530_vm11, %v1898_v34 }
 0x4ea   : > { %v1646_v35 = vpop.f32.mrf.mxu0 }
 0x50d   : > { %v1833_v6 = vpop.xlane.xlu0 %1832 }
 0x50e   : > { %3246 = vrcp.f32 %v1833_v6  ;;  %v3276_v6 = vld [vmem:[#allocation2 + $0x20] sm:$0xff] }
 0x514   : > { %v3247_v33 = vpop.eup %3246 }
 0x515   : > { %v1845_v23 = vmul.f32 %v3247_v33, %v4004_v38 }
 0x517   : > { %v1851_v28 = vpack.c.bf16 %v1845_v23, %v1845_v23 }
 0x519   : > { %v1897_v37 = vunpack.c.l.b16 %v1851_v28 }
 0x51b   : > { %v1899_v39 = vpack.c.b16 %v1897_v37, %v1897_v37 }
 0x51d   : > { %2999 = vmatmul.msk.bf16.gmra.mxu1 %vm1530_vm11, %v1899_v39  ;;  %v3277_v39 = vld [vmem:[#allocation2 + $0x28] sm:$0xff] }
 0x524   : > { %v1683_v36 = vpop.f32.mrf.mxu1 }
 0x52c   : > { %v1685_v40 = vpop.f32.mrf.mxu1 }
 0x534   : > { %v1688_v7 = vpop.f32.mrf.mxu1 }
 0x53c   : > { %v1690_v41 = vpop.f32.mrf.mxu1 }
 0x549   : > { %v1883_v43 = vpop.f32.mrf.mxu0 }
 0x551   : > { %v1885_v44 = vpop.f32.mrf.mxu0 }
 0x552   : > { %v3161_v57 = vpack.i.bf16 %v1885_v44, %v1883_v43 }
 0x554   : > { %3162 = vrot.lane.b32.xlu2 %v3161_v57, %s3381_s29 }
 0x559   : > { %v1888_v48 = vpop.f32.mrf.mxu0 }
 0x561   : > { %v1890_v51 = vpop.f32.mrf.mxu0 }
 0x562   : > { %v1923_v52 = vpop.f32.mrf.mxu1 }
 0x563   : > { %v3166_v38 = vpack.i.bf16 %v1923_v52, %v1888_v48 }
 0x565   : > { %3167 = vrot.lane.b32.xlu1 %v3166_v38, %s3381_s29 }
 0x56a   : > { %v1925_v55 = vpop.f32.mrf.mxu1 }
 0x59a   : > { %v1928_v54 = vpop.f32.mrf.mxu1 }
 0x59b   : > { %v3171_v2 = vpack.i.bf16 %v1928_v54, %v1925_v55 }
 0x59d   : > { %3172 = vrot.lane.b32.xlu0 %v3171_v2, %s3381_s29 }
 0x5a2   : > { %v1930_v58 = vpop.f32.mrf.mxu1 }
 0x5ae   : > { %v3163_v59 = vpop.permute.xlu2 %3162 }
 0x5af   : > { %v3165_v4 = vunpack.i.h.bf16 %v3163_v59  ;;  %v3164_v27 = vunpack.i.l.bf16 %v3163_v59 }
 0x5b1   : > { %v1957_v60 = vsel %vm1441_vm8, %v1641_v5, %v3165_v4  ;;  %v1956_v0 = vsel %vm1441_vm8, %v1639_v18, %v3164_v27 }
 0x5b2   : > { %v1962_v3 = vpack.c.bf16 %v1957_v60, %v1956_v0 }
 0x5b4   : > { %3008 = vmatmul.msk.bf16.vlgmr.msra.gmra.mxu2 %vm1105_vm3, %v1962_v3 }
 0x5d7   : > { %v3168_v42 = vpop.permute.xlu1 %3167 }
 0x5d8   : > { %v3170_v9 = vunpack.i.h.bf16 %v3168_v42  ;;  %v3169_v53 = vunpack.i.l.bf16 %v3168_v42 }
 0x5da   : > { %v1958_v10 = vsel %vm1441_vm8, %v1644_v32, %v3169_v53  ;;  %v1959_v11 = vsel %vm1441_vm8, %v1683_v36, %v3170_v9 }
 0x5db   : > { %v1963_v8 = vpack.c.bf16 %v1959_v11, %v1958_v10 }
 0x5dd   : > { %3009 = vmatmul.msk.bf16.gmra.mxu2 %vm1105_vm3, %v1963_v8 }
 0x60f   : > { %v3173_v12 = vpop.permute.xlu0 %3172 }
 0x610   : > { %v3175_v46 = vunpack.i.h.bf16 %v3173_v12  ;;  %v3174_v47 = vunpack.i.l.bf16 %v3173_v12 }
 0x612   : > { %v1960_v62 = vsel %vm1441_vm8, %v1685_v40, %v3174_v47  ;;  %v1961_v13 = vsel %vm1441_vm8, %v1688_v7, %v3175_v46 }
 0x613   : > { %v1964_v15 = vpack.c.bf16 %v1961_v13, %v1960_v62 }
 0x615   : > { %3010 = vmatmul.msk.bf16.gmra.mxu2 %vm1105_vm3, %v1964_v15  ;;  %v3073_v15 = vld [vmem:[%s3641_s25 + $0x8] sm:$0xff] }
 0x616   : > { %2220 = vmatpush.bf16.msrb.mxu3 %v3073_v15 }
 0x637   : > { %v1999_v1 = vpop.f32.mrf.mxu2 }
 0x638   : > { %v2014_v17 = vadd.f32 %v3272_v61, %v1999_v1  ;;  %v3072_v61 = vld [vmem:[%s3641_s25] sm:$0xff] }
 0x639   : > { %2221 = vmatpush.bf16.msrb.mxu3 %v3072_v61 }
 0x63a   : > { %v4040_v18 = vadd.f32 %v3181_v16, %v2014_v17 }
 0x63c   : > { %v2032_v20 = vsel %vm1105_vm3, %v4040_v18, 0.0 }
 0x63d   : > { %2033 = vadd.xlane.f32.xlu2 %v2032_v20 }
 0x63f   : > { %v2001_v63 = vpop.f32.mrf.mxu2 }
 0x640   : > { %v2015_v14 = vadd.f32 %v3273_v22, %v2001_v63 }
 0x642   : > { %v4044_v56 = vadd.f32 %v3181_v16, %v2015_v14 }
 0x644   : > { %v2035_v24 = vsel %vm1105_vm3, %v4044_v56, 0.0 }
 0x645   : > { %2036 = vadd.xlane.f32.xlu1 %v2035_v24 }
 0x660   : > { %v2004_v5 = vpop.f32.mrf.mxu2 }
 0x661   : > { %v2016_v26 = vadd.f32 %v3274_v25, %v2004_v5 }
 0x663   : > { %v4048_v21 = vadd.f32 %v3181_v16, %v2016_v26 }
 0x665   : > { %v2038_v30 = vsel %vm1105_vm3, %v4048_v21, 0.0 }
 0x666   : > { %2039 = vadd.xlane.f32.xlu0 %v2038_v30 }
 0x668   : > { %v2006_v19 = vpop.f32.mrf.mxu2 }
 0x669   : > { %v2017_v31 = vadd.f32 %v3275_v29, %v2006_v19 }
 0x66b   : > { %v4052_v32 = vadd.f32 %v3181_v16, %v2017_v31 }
 0x66d   : > { %v2041_v34 = vsel %vm1105_vm3, %v4052_v32, 0.0 }
 0x66e   : > { %2042 = vadd.xlane.f32.xlu2 %v2041_v34 }
 0x698   : > { %v2009_v35 = vpop.f32.mrf.mxu2 }
 0x699   : > { %v2018_v33 = vadd.f32 %v3276_v6, %v2009_v35  ;;  %v4115_v6 = vld [vmem:[%s4422_s19] ss:$0 sm:$0xff] }
 0x69b   : > { %v4056_v23 = vadd.f32 %v3181_v16, %v2018_v33 }
 0x69d   : > { %v2044_v28 = vsel %vm1105_vm3, %v4056_v23, 0.0 }
 0x69e   : > { %2045 = vadd.xlane.f32.xlu1 %v2044_v28 }
 0x6a0   : > { %v2011_v37 = vpop.f32.mrf.mxu2 }
 0x6a1   : > { %v2019_v36 = vadd.f32 %v3277_v39, %v2011_v37  ;;  %v4123_v39 = vld [vmem:[%s964_s0] ss:$0 sm:$0xff] }
 0x6a3   : > { %v4060_v40 = vadd.f32 %v3181_v16, %v2019_v36 }
 0x6a5   : > { %v2047_v7 = vsel %vm1105_vm3, %v4060_v40, 0.0 }
 0x6a6   : > { %2048 = vadd.xlane.f32.xlu2 %v2047_v7 }
 0x6b0   : > { %v2034_v41 = vpop.xlane.xlu2 %2033 }
 0x6b1   : > { %v2050_v43 = vmul.f32 %v2034_v41, %v3698_v49 }
 0x6b3   : > { %v4066_v44 = vsub.f32 %v4040_v18, %v2050_v43 }
 0x6b5   : > { %v2062_v57 = vmul.f32 %v4066_v44, %v4066_v44 }
 0x6b7   : > { %v2068_v48 = vsel %vm1105_vm3, %v2062_v57, 0.0 }
 0x6b8   : > { %v2037_v51 = vpop.xlane.xlu1 %2036  ;;  %2069 = vadd.xlane.f32.xlu1 %v2068_v48 }
 0x6b9   : > { %v2051_v52 = vmul.f32 %v2037_v51, %v3698_v49 }
 0x6bb   : > { %v4073_v38 = vsub.f32 %v4044_v56, %v2051_v52 }
 0x6bd   : > { %v2063_v50 = vmul.f32 %v4073_v38, %v4073_v38 }
 0x6bf   : > { %v2071_v45 = vsel %vm1105_vm3, %v2063_v50, 0.0 }
 0x6c0   : > { %2072 = vadd.xlane.f32.xlu2 %v2071_v45 }
 0x6d9   : > { %v2040_v55 = vpop.xlane.xlu0 %2039 }
 0x6da   : > { %v2052_v54 = vmul.f32 %v2040_v55, %v3698_v49 }
 0x6dc   : > { %v4080_v2 = vsub.f32 %v4048_v21, %v2052_v54 }
 0x6de   : > { %v2064_v58 = vmul.f32 %v4080_v2, %v4080_v2 }
 0x6e0   : > { %v2074_v59 = vsel %vm1105_vm3, %v2064_v58, 0.0 }
 0x6e1   : > { %v2043_v4 = vpop.xlane.xlu2 %2042  ;;  %2075 = vadd.xlane.f32.xlu0 %v2074_v59 }
 0x6e2   : > { %v2053_v27 = vmul.f32 %v2043_v4, %v3698_v49 }
 0x6e4   : > { %v4087_v60 = vsub.f32 %v4052_v32, %v2053_v27 }
 0x6e6   : > { %v2065_v0 = vmul.f32 %v4087_v60, %v4087_v60 }
 0x6e8   : > { %v2077_v3 = vsel %vm1105_vm3, %v2065_v0, 0.0 }
 0x6e9   : > { %2078 = vadd.xlane.f32.xlu1 %v2077_v3 }
 0x711   : > { %v2046_v42 = vpop.xlane.xlu1 %2045 }
 0x712   : > { %v2054_v9 = vmul.f32 %v2046_v42, %v3698_v49 }
 0x714   : > { %v4094_v53 = vsub.f32 %v4056_v23, %v2054_v9 }
 0x716   : > { %v2066_v10 = vmul.f32 %v4094_v53, %v4094_v53 }
 0x718   : > { %v2080_v11 = vsel %vm1105_vm3, %v2066_v10, 0.0 }
 0x719   : > { %2081 = vadd.xlane.f32.xlu2 %v2080_v11  ;;  %v2049_v8 = vpop.xlane.xlu2 %2048 }
 0x71a   : > { %v2055_v12 = vmul.f32 %v2049_v8, %v3698_v49 }
 0x71c   : > { %v4101_v46 = vsub.f32 %v4060_v40, %v2055_v12 }
 0x71e   : > { %v2067_v47 = vmul.f32 %v4101_v46, %v4101_v46 }
 0x720   : > { %v2083_v62 = vsel %vm1105_vm3, %v2067_v47, 0.0 }
 0x721   : > { %2084 = vadd.xlane.f32.xlu0 %v2083_v62 }
 0x72b   : > { %v2070_v13 = vpop.xlane.xlu1 %2069 }
 0x72c   : > { %v2086_v16 = vmul.f32 %v2070_v13, %v3698_v49 }
 0x72e   : > { %v2092_v1 = vadd.f32 1e-05, %v2086_v16 }
 0x730   : > { %3248 = vrsqrt.f32 %v2092_v1  ;;  %vm2104_vm13 = vweird.f32 %v2092_v1 }
 0x733   : > { %v2073_v17 = vpop.xlane.xlu2 %2072 }
 0x734   : > { %v2087_v20 = vmul.f32 %v2073_v17, %v3698_v49 }
 0x736   : > { %v3249_v63 = vpop.eup %3248  ;;  %v2093_v22 = vadd.f32 1e-05, %v2087_v20 }
 0x737   : > { %v2099_v14 = vmul.f32 %v3249_v63, %v2092_v1  ;;  %vm2105_vm12 = vweird.f32 %v3249_v63 }
 0x738   : > { %3250 = vrsqrt.f32 %v2093_v22  ;;  %vm2106_vm14 = vmor %vm2104_vm13, %vm2105_vm12  ;;  %vm2114_vm0 = vweird.f32 %v2093_v22 }
 0x739   : > { %v2100_v24 = vmul.f32 %v3249_v63, %v2099_v14 }
 0x73b   : > { %v2101_v5 = vmul.f32 0.5, %v2100_v24 }
 0x73d   : > { %v2102_v25 = vsub.f32 1.5, %v2101_v5 }
 0x73e   : > { %v3251_v26 = vpop.eup %3250 }
 0x73f   : > { %v2103_v30 = vmul.f32 %v3249_v63, %v2102_v25  ;;  %v2109_v19 = vmul.f32 %v3251_v26, %v2093_v22  ;;  %vm2115_vm15 = vweird.f32 %v3251_v26 }
 0x740   : > { %vm2116_vm1 = vmor %vm2114_vm0, %vm2115_vm15 }
 0x741   : > { %v2110_v29 = vmul.f32 %v3251_v26, %v2109_v19  ;;  %v2107_v31 = vsel %vm2106_vm14, %v3249_v63, %v2103_v30 }
 0x742   : > { %v2158_v33 = vmul.f32 %v2107_v31, %v4066_v44 }
 0x743   : > { %v2111_v34 = vmul.f32 0.5, %v2110_v29 }
 0x744   : > { %v2167_v36 = vmul.f32 %v4115_v6, %v2158_v33 }
 0x745   : > { %v2112_v35 = vsub.f32 1.5, %v2111_v34 }
 0x746   : > { %v2176_v43 = vadd.f32 %v4123_v39, %v2167_v36 }
 0x747   : > { %v2113_v28 = vmul.f32 %v3251_v26, %v2112_v35 }
 0x749   : > { %v2117_v37 = vsel %vm2116_vm1, %v3251_v26, %v2113_v28 }
 0x74a   : > { %v2159_v7 = vmul.f32 %v2117_v37, %v4073_v38 }
 0x74c   : > { %v2168_v41 = vmul.f32 %v4115_v6, %v2159_v7 }
 0x74e   : > { %v2177_v44 = vadd.f32 %v4123_v39, %v2168_v41 }
 0x750   : > { %v2182_v57 = vpack.c.bf16 %v2177_v44, %v2176_v43 }
 0x752   : > { %3019 = vmatmul.msk.bf16.vlgmr.msrb.gmra.mxu3 %vm1105_vm3, %v2182_v57 }
 0x754   : > { %v2076_v48 = vpop.xlane.xlu0 %2075 }
 0x755   : > { %v2088_v51 = vmul.f32 %v2076_v48, %v3698_v49 }
 0x757   : > { %v2094_v52 = vadd.f32 1e-05, %v2088_v51 }
 0x759   : > { %3252 = vrsqrt.f32 %v2094_v52  ;;  %vm2124_vm4 = vweird.f32 %v2094_v52 }
 0x75c   : > { %v2079_v50 = vpop.xlane.xlu1 %2078 }
 0x75d   : > { %v2089_v45 = vmul.f32 %v2079_v50, %v3698_v49 }
 0x75f   : > { %v3253_v55 = vpop.eup %3252  ;;  %v2095_v54 = vadd.f32 1e-05, %v2089_v45 }
 0x760   : > { %v2119_v38 = vmul.f32 %v3253_v55, %v2094_v52  ;;  %vm2125_vm2 = vweird.f32 %v3253_v55 }
 0x761   : > { %3254 = vrsqrt.f32 %v2095_v54  ;;  %vm2126_vm5 = vmor %vm2124_vm4, %vm2125_vm2  ;;  %vm2134_vm7 = vweird.f32 %v2095_v54 }
 0x762   : > { %v2120_v58 = vmul.f32 %v3253_v55, %v2119_v38 }
 0x764   : > { %v2121_v59 = vmul.f32 0.5, %v2120_v58 }
 0x766   : > { %v2122_v4 = vsub.f32 1.5, %v2121_v59 }
 0x767   : > { %v3255_v27 = vpop.eup %3254 }
 0x768   : > { %v2123_v0 = vmul.f32 %v3253_v55, %v2122_v4  ;;  %v2129_v3 = vmul.f32 %v3255_v27, %v2095_v54  ;;  %vm2135_vm6 = vweird.f32 %v3255_v27 }
 0x769   : > { %vm2136_vm8 = vmor %vm2134_vm7, %vm2135_vm6 }
 0x76a   : > { %v2130_v42 = vmul.f32 %v3255_v27, %v2129_v3  ;;  %v2127_v9 = vsel %vm2126_vm5, %v3253_v55, %v2123_v0 }
 0x76b   : > { %v2160_v8 = vmul.f32 %v2127_v9, %v4080_v2 }
 0x76c   : > { %v2131_v10 = vmul.f32 0.5, %v2130_v42 }
 0x76d   : > { %v2169_v13 = vmul.f32 %v4115_v6, %v2160_v8 }
 0x76e   : > { %v2132_v11 = vsub.f32 1.5, %v2131_v10  ;;  %v3077_v10 = vld [vmem:[%s3655_s15 + $0x18] sm:$0xff] }
 0x76f   : > { %v2178_v16 = vadd.f32 %v4123_v39, %v2169_v13  ;;  %2551 = vmatpush.bf16.msra.mxu0 %v3077_v10 }
 0x770   : > { %v2133_v12 = vmul.f32 %v3255_v27, %v2132_v11 }
 0x772   : > { %v2137_v47 = vsel %vm2136_vm8, %v3255_v27, %v2133_v12  ;;  %vm2537_vm8 = vcmask 523264  }
 0x773   : > { %v2161_v62 = vmul.f32 %v2137_v47, %v4087_v60 }
 0x775   : > { %v2170_v15 = vmul.f32 %v4115_v6, %v2161_v62 }
 0x777   : > { %v2179_v1 = vadd.f32 %v4123_v39, %v2170_v15 }
 0x779   : > { %v2183_v61 = vpack.c.bf16 %v2179_v1, %v2178_v16  ;;  %v3076_v16 = vld [vmem:[%s3655_s15 + $0x10] sm:$0xff] }
 0x77a   : > { %2552 = vmatpush.bf16.msra.mxu0 %v3076_v16 }
 0x77b   : > { %3020 = vmatmul.msk.bf16.gmra.mxu3 %vm1105_vm3, %v2183_v61 }
 0x78c   : > { %v2082_v17 = vpop.xlane.xlu2 %2081 }
 0x78d   : > { %v2090_v2 = vmul.f32 %v2082_v17, %v3698_v49 }
 0x78f   : > { %v2096_v20 = vadd.f32 1e-05, %v2090_v2 }
 0x791   : > { %3256 = vrsqrt.f32 %v2096_v20  ;;  %vm2144_vm10 = vweird.f32 %v2096_v20 }
 0x794   : > { %v2085_v63 = vpop.xlane.xlu0 %2084 }
 0x795   : > { %v2091_v22 = vmul.f32 %v2085_v63, %v3698_v49 }
 0x797   : > { %v3257_v60 = vpop.eup %3256  ;;  %v2097_v14 = vadd.f32 1e-05, %v2091_v22 }
 0x798   : > { %v2139_v24 = vmul.f32 %v3257_v60, %v2096_v20  ;;  %vm2145_vm9 = vweird.f32 %v3257_v60 }
 0x799   : > { %3258 = vrsqrt.f32 %v2097_v14  ;;  %vm2146_vm11 = vmor %vm2144_vm10, %vm2145_vm9  ;;  %vm2154_vm13 = vweird.f32 %v2097_v14 }
 0x79a   : > { %v2140_v5 = vmul.f32 %v3257_v60, %v2139_v24 }
 0x79c   : > { %v2141_v25 = vmul.f32 0.5, %v2140_v5 }
 0x79e   : > { %v2142_v26 = vsub.f32 1.5, %v2141_v25 }
 0x79f   : > { %v3259_v30 = vpop.eup %3258 }
 0x7a0   : > { %v2143_v19 = vmul.f32 %v3257_v60, %v2142_v26  ;;  %v2149_v29 = vmul.f32 %v3259_v30, %v2097_v14  ;;  %vm2155_vm12 = vweird.f32 %v3259_v30 }
 0x7a1   : > { %vm2156_vm14 = vmor %vm2154_vm13, %vm2155_vm12 }
 0x7a2   : > { %v2150_v31 = vmul.f32 %v3259_v30, %v2149_v29  ;;  %v2147_v34 = vsel %vm2146_vm11, %v3257_v60, %v2143_v19  ;;  %v3075_v60 = vld [vmem:[%s3655_s15 + $0x8] sm:$0xff] }
 0x7a3   : > { %v2162_v28 = vmul.f32 %v2147_v34, %v4094_v53  ;;  %v4154_v53 = vld [vmem:[%s972_s23] ss:$0 sm:$0xff]  ;;  %2553 = vmatpush.bf16.msra.mxu0 %v3075_v60 }
 0x7a4   : > { %v2151_v35 = vmul.f32 0.5, %v2150_v31 }
 0x7a5   : > { %v2171_v41 = vmul.f32 %v4115_v6, %v2162_v28 }
 0x7a6   : > { %v2152_v33 = vsub.f32 1.5, %v2151_v35 }
 0x7a7   : > { %v2180_v44 = vadd.f32 %v4123_v39, %v2171_v41 }
 0x7a8   : > { %v2153_v37 = vmul.f32 %v3259_v30, %v2152_v33 }
 0x7aa   : > { %v2157_v36 = vsel %vm2156_vm14, %v3259_v30, %v2153_v37  ;;  %v3074_v30 = vld [vmem:[%s3655_s15] sm:$0xff] }
 0x7ab   : > { %v2163_v7 = vmul.f32 %v2157_v36, %v4101_v46  ;;  %2554 = vmatpush.bf16.msra.mxu0 %v3074_v30 }
 0x7ad   : > { %v2172_v43 = vmul.f32 %v4115_v6, %v2163_v7 }
 0x7af   : > { %v2181_v57 = vadd.f32 %v4123_v39, %v2172_v43 }
 0x7b1   : > { %v2184_v48 = vpack.c.bf16 %v2181_v57, %v2180_v44 }
 0x7b3   : > { %3021 = vmatmul.msk.bf16.gmra.mxu3 %vm1105_vm3, %v2184_v48 }
 0x7d5   : > { %v2223_v51 = vpop.f32.mrf.mxu3 }
 0x7d6   : > { %v4157_v46 = vadd.f32 %v4154_v53, %v2223_v51 }
 0x7d8   : > { %v4160_v52 = vmul.f32 0.70710677, %v4157_v46 }
 0x7da   : > { %v2250_v6 = vmul.f32 %v4160_v52, %v4160_v52 }
 0x7dc   : > { %v2251_v39 = vmin.f32 %v2250_v6, 16.0 }
 0x7dd   : > { %v2225_v50 = vpop.f32.mrf.mxu3 }
 0x7de   : > { %v2252_v45 = vmul.f32 2.1237322e-06, %v2251_v39  ;;  %v2263_v55 = vmul.f32 3.8918573e-05, %v2251_v39  ;;  %v4165_v54 = vadd.f32 %v4154_v53, %v2225_v50 }
 0x7e0   : > { %v2253_v38 = vadd.f32 0.00028619796, %v2252_v45  ;;  %v2264_v58 = vadd.f32 0.001143296, %v2263_v55  ;;  %v4168_v59 = vmul.f32 0.70710677, %v4165_v54 }
 0x7e2   : > { %v2265_v4 = vmul.f32 %v2264_v58, %v2251_v39  ;;  %v2254_v27 = vmul.f32 %v2253_v38, %v2251_v39  ;;  %v2290_v0 = vmul.f32 %v4168_v59, %v4168_v59 }
 0x7e4   : > { %v2266_v3 = vadd.f32 0.014752088, %v2265_v4  ;;  %v2291_v42 = vmin.f32 %v2290_v0, 16.0  ;;  %v2255_v11 = vadd.f32 0.0036580483, %v2254_v27 }
 0x7e6   : > { %v2267_v9 = vmul.f32 %v2266_v3, %v2251_v39  ;;  %v2292_v8 = vmul.f32 2.1237322e-06, %v2291_v42  ;;  %v2303_v12 = vmul.f32 3.8918573e-05, %v2291_v42  ;;  %v2256_v1 = vmul.f32 %v2255_v11, %v2251_v39 }
 0x7e8   : > { %v2268_v47 = vadd.f32 0.112945676, %v2267_v9  ;;  %v2293_v62 = vadd.f32 0.00028619796, %v2292_v8  ;;  %v2304_v13 = vadd.f32 0.001143296, %v2303_v12 }
 0x7e9   : > { %v2257_v14 = vadd.f32 0.05243302, %v2256_v1 }
 0x7ea   : > { %v2269_v15 = vmul.f32 %v2268_v47, %v2251_v39  ;;  %v2294_v61 = vmul.f32 %v2293_v62, %v2291_v42  ;;  %v2305_v17 = vmul.f32 %v2304_v13, %v2291_v42 }
 0x7eb   : > { %v2258_v19 = vmul.f32 %v2257_v14, %v2251_v39 }
 0x7ec   : > { %v2270_v2 = vadd.f32 0.4994258, %v2269_v15  ;;  %v2295_v20 = vadd.f32 0.0036580483, %v2294_v61  ;;  %v2306_v63 = vadd.f32 0.014752088, %v2305_v17 }
 0x7ed   : > { %v2259_v35 = vadd.f32 0.18741608, %v2258_v19 }
 0x7ee   : > { %v2271_v22 = vmul.f32 %v2270_v2, %v2251_v39  ;;  %v2307_v24 = vmul.f32 %v2306_v63, %v2291_v42  ;;  %v2296_v25 = vmul.f32 %v2295_v20, %v2291_v42 }
 0x7ef   : > { %v2260_v41 = vmul.f32 %v2259_v35, %v2251_v39  ;;  %v2238_v35 = vmul.f32 0.5, %v4157_v46 }
 0x7f0   : > { %v2272_v5 = vadd.f32 1.0, %v2271_v22  ;;  %v2308_v26 = vadd.f32 0.112945676, %v2307_v24  ;;  %v2297_v31 = vadd.f32 0.05243302, %v2296_v25 }
 0x7f1   : > { %v2261_v45 = vadd.f32 1.1283791, %v2260_v41 }
 0x7f2   : > { %3260 = vrcp.f32 %v2272_v5  ;;  %v2309_v29 = vmul.f32 %v2308_v26, %v2291_v42  ;;  %v2298_v37 = vmul.f32 %v2297_v31, %v2291_v42  ;;  %v2284_v44 = vand.u32 2147483648, %v2272_v5 }
 0x7f3   : > { %v2282_v51 = vand.u32 2147483647, %v2272_v5  ;;  %vm2278_vm0 = vweird.f32 %v2272_v5  ;;  %v2262_v10 = vmul.f32 %v2261_v45, %v4160_v52 }
 0x7f4   : > { %v2310_v34 = vadd.f32 0.4994258, %v2309_v29  ;;  %v2299_v57 = vadd.f32 0.18741608, %v2298_v37  ;;  %v2285_v38 = vor.u32 1.1754944e-38, %v2284_v44  ;;  %v2239_v37 = vmul.f32 0.5, %v4165_v54 }
 0x7f5   : > { %vm2283_vm2 = vcmp.eq.f32.partialorder %v2282_v51, 8.507059e+37 }
 0x7f6   : > { %v2311_v33 = vmul.f32 %v2310_v34, %v2291_v42  ;;  %v2300_v58 = vmul.f32 %v2299_v57, %v2291_v42 }
 0x7f8   : > { %v3261_v28 = vpop.eup %3260  ;;  %v2312_v7 = vadd.f32 1.0, %v2311_v33  ;;  %v2301_v11 = vadd.f32 1.1283791, %v2300_v58 }
 0x7f9   : > { %v2274_v36 = vmul.f32 %v3261_v28, %v2272_v5  ;;  %vm2279_vm15 = vweird.f32 %v3261_v28 }
 0x7fa   : > { %3262 = vrcp.f32 %v2312_v7  ;;  %vm2280_vm1 = vmor %vm2278_vm0, %vm2279_vm15  ;;  %v2322_v42 = vand.u32 2147483647, %v2312_v7  ;;  %v2324_v62 = vand.u32 2147483648, %v2312_v7  ;;  %vm2318_vm5 = vweird.f32 %v2312_v7 }
 0x7fb   : > { %v2275_v43 = vsub.f32 1.0, %v2274_v36  ;;  %v2302_v20 = vmul.f32 %v2301_v11, %v4168_v59 }
 0x7fc   : > { %v2325_v63 = vor.u32 1.1754944e-38, %v2324_v62  ;;  %vm2323_vm7 = vcmp.eq.f32.partialorder %v2322_v42, 8.507059e+37 }
 0x7fd   : > { %v2276_v48 = vmul.f32 %v3261_v28, %v2275_v43 }
 0x7fe   : > { %v2228_v6 = vpop.f32.mrf.mxu3 }
 0x7ff   : > { %v4177_v50 = vadd.f32 %v4154_v53, %v2228_v6  ;;  %v2277_v55 = vadd.f32 %v3261_v28, %v2276_v48 }
 0x800   : > { %v3263_v39 = vpop.eup %3262 }
 0x801   : > { %v4180_v4 = vmul.f32 0.70710677, %v4177_v50  ;;  %v2281_v27 = vsel %vm2280_vm1, %v3261_v28, %v2277_v55  ;;  %v2314_v3 = vmul.f32 %v3263_v39, %v2312_v7  ;;  %vm2319_vm4 = vweird.f32 %v3263_v39 }
 0x802   : > { %v2286_v0 = vsel %vm2283_vm2, %v2285_v38, %v2281_v27  ;;  %vm2320_vm6 = vmor %vm2318_vm5, %vm2319_vm4 }
 0x803   : > { %v2330_v9 = vmul.f32 %v4180_v4, %v4180_v4  ;;  %v2315_v8 = vsub.f32 1.0, %v2314_v3  ;;  %v2287_v47 = vmul.f32 %v2286_v0, %v2262_v10 }
 0x805   : > { %v4185_v12 = vmin.f32 %v2330_v9, 16.0  ;;  %v2316_v15 = vmul.f32 %v3263_v39, %v2315_v8  ;;  %v3022_v60 = vclamps-f32 %v2287_v47, 1.0 }
 0x806   : > { %v2230_v13 = vpop.f32.mrf.mxu3 }
 0x807   : > { %v2332_v16 = vmul.f32 2.1237322e-06, %v4185_v12  ;;  %v2343_v1 = vmul.f32 3.8918573e-05, %v4185_v12  ;;  %v4190_v61 = vadd.f32 %v4154_v53, %v2230_v13  ;;  %v2317_v17 = vadd.f32 %v3263_v39, %v2316_v15 }
 0x808   : > { %v2490_v59 = vadd.f32 1.0, %v3022_v60 }
 0x809   : > { %v2333_v52 = vadd.f32 0.00028619796, %v2332_v16  ;;  %v2344_v2 = vadd.f32 0.001143296, %v2343_v1  ;;  %v4194_v22 = vmul.f32 0.70710677, %v4190_v61  ;;  %v2321_v14 = vsel %vm2320_vm6, %v3263_v39, %v2317_v17 }
 0x80a   : > { %v2326_v5 = vsel %vm2323_vm7, %v2325_v63, %v2321_v14  ;;  %v2496_v57 = vmul.f32 %v2490_v59, %v2238_v35 }
 0x80b   : > { %v2345_v24 = vmul.f32 %v2344_v2, %v4185_v12  ;;  %v2370_v25 = vmul.f32 %v4194_v22, %v4194_v22  ;;  %v2327_v26 = vmul.f32 %v2326_v5, %v2302_v20  ;;  %v2334_v30 = vmul.f32 %v2333_v52, %v4185_v12 }
 0x80d   : > { %v2346_v19 = vadd.f32 0.014752088, %v2345_v24  ;;  %v2371_v29 = vmin.f32 %v2370_v25, 16.0  ;;  %v3023_v31 = vclamps-f32 %v2327_v26, 1.0  ;;  %v2335_v7 = vadd.f32 0.0036580483, %v2334_v30 }
 0x80f   : > { %v2347_v34 = vmul.f32 %v2346_v19, %v4185_v12  ;;  %v2372_v33 = vmul.f32 2.1237322e-06, %v2371_v29  ;;  %v2383_v28 = vmul.f32 3.8918573e-05, %v2371_v29  ;;  %v2491_v36 = vadd.f32 1.0, %v3023_v31 }
 0x810   : > { %v2336_v38 = vmul.f32 %v2335_v7, %v4185_v12 }
 0x811   : > { %v2348_v41 = vadd.f32 0.112945676, %v2347_v34  ;;  %v2373_v43 = vadd.f32 0.00028619796, %v2372_v33  ;;  %v2384_v44 = vadd.f32 0.001143296, %v2383_v28  ;;  %v2497_v48 = vmul.f32 %v2491_v36, %v2239_v37 }
 0x812   : > { %v2337_v0 = vadd.f32 0.05243302, %v2336_v38  ;;  %v2241_v38 = vmul.f32 0.5, %v4190_v61 }
 0x813   : > { %v2349_v51 = vmul.f32 %v2348_v41, %v4185_v12  ;;  %v2374_v6 = vmul.f32 %v2373_v43, %v2371_v29  ;;  %v2385_v45 = vmul.f32 %v2384_v44, %v2371_v29  ;;  %v2502_v55 = vpack.c.bf16 %v2497_v48, %v2496_v57 }
 0x814   : > { %v2338_v8 = vmul.f32 %v2337_v0, %v4185_v12 }
 0x815   : > { %v2350_v46 = vadd.f32 0.4994258, %v2349_v51  ;;  %v2375_v58 = vadd.f32 0.0036580483, %v2374_v6  ;;  %v2386_v39 = vadd.f32 0.014752088, %v2385_v45  ;;  %3044 = vmatmul.msk.bf16.vlgmr.msra.gmra.mxu0 %vm2537_vm8, %v2502_v55 }
 0x816   : > { %v2339_v15 = vadd.f32 0.18741608, %v2338_v8  ;;  %v2240_v55 = vmul.f32 0.5, %v4177_v50 }
 0x817   : > { %v2351_v54 = vmul.f32 %v2350_v46, %v4185_v12  ;;  %v2387_v27 = vmul.f32 %v2386_v39, %v2371_v29  ;;  %v2376_v9 = vmul.f32 %v2375_v58, %v2371_v29 }
 0x818   : > { %v2340_v2 = vmul.f32 %v2339_v15, %v4185_v12 }
 0x819   : > { %v2352_v3 = vadd.f32 1.0, %v2351_v54  ;;  %v2388_v10 = vadd.f32 0.112945676, %v2387_v27  ;;  %v2377_v47 = vadd.f32 0.05243302, %v2376_v9 }
 0x81a   : > { %v2341_v5 = vadd.f32 1.1283791, %v2340_v2 }
 0x81b   : > { %3264 = vrcp.f32 %v2352_v3  ;;  %v2389_v11 = vmul.f32 %v2388_v10, %v2371_v29  ;;  %v2378_v1 = vmul.f32 %v2377_v47, %v2371_v29  ;;  %v2364_v63 = vand.u32 2147483648, %v2352_v3 }
 0x81c   : > { %v2362_v14 = vand.u32 2147483647, %v2352_v3  ;;  %vm2358_vm10 = vweird.f32 %v2352_v3  ;;  %v2342_v34 = vmul.f32 %v2341_v5, %v4180_v4 }
 0x81d   : > { %v2390_v42 = vadd.f32 0.4994258, %v2389_v11  ;;  %v2379_v60 = vadd.f32 0.18741608, %v2378_v1  ;;  %v2365_v30 = vor.u32 1.1754944e-38, %v2364_v63 }
 0x81e   : > { %vm2363_vm12 = vcmp.eq.f32.partialorder %v2362_v14, 8.507059e+37 }
 0x81f   : > { %v2391_v62 = vmul.f32 %v2390_v42, %v2371_v29  ;;  %v2380_v19 = vmul.f32 %v2379_v60, %v2371_v29 }
 0x821   : > { %v3265_v13 = vpop.eup %3264  ;;  %v2392_v17 = vadd.f32 1.0, %v2391_v62  ;;  %v2381_v12 = vadd.f32 1.1283791, %v2380_v19 }
 0x822   : > { %v2354_v16 = vmul.f32 %v3265_v13, %v2352_v3  ;;  %vm2359_vm9 = vweird.f32 %v3265_v13 }
 0x823   : > { %3266 = vrcp.f32 %v2392_v17  ;;  %vm2360_vm11 = vmor %vm2358_vm10, %vm2359_vm9  ;;  %v2404_v33 = vand.u32 2147483648, %v2392_v17  ;;  %v2402_v36 = vand.u32 2147483647, %v2392_v17  ;;  %vm2398_vm14 = vweird.f32 %v2392_v17 }
 0x824   : > { %v2355_v52 = vsub.f32 1.0, %v2354_v16  ;;  %v2382_v44 = vmul.f32 %v2381_v12, %v4194_v22 }
 0x825   : > { %v2405_v41 = vor.u32 1.1754944e-38, %v2404_v33  ;;  %vm2403_vm0 = vcmp.eq.f32.partialorder %v2402_v36, 8.507059e+37 }
 0x826   : > { %v2356_v20 = vmul.f32 %v3265_v13, %v2355_v52 }
 0x828   : > { %v2357_v24 = vadd.f32 %v3265_v13, %v2356_v20 }
 0x829   : > { %v3267_v25 = vpop.eup %3266 }
 0x82a   : > { %v2361_v26 = vsel %vm2360_vm11, %v3265_v13, %v2357_v24  ;;  %v2394_v59 = vmul.f32 %v3267_v25, %v2392_v17  ;;  %vm2399_vm13 = vweird.f32 %v3267_v25 }
 0x82b   : > { %v2366_v31 = vsel %vm2363_vm12, %v2365_v30, %v2361_v26  ;;  %vm2400_vm15 = vmor %vm2398_vm14, %vm2399_vm13 }
 0x82c   : > { %v2395_v35 = vsub.f32 1.0, %v2394_v59  ;;  %v2367_v28 = vmul.f32 %v2366_v31, %v2342_v34 }
 0x82e   : > { %v2396_v37 = vmul.f32 %v3267_v25, %v2395_v35  ;;  %v3024_v43 = vclamps-f32 %v2367_v28, 1.0 }
 0x830   : > { %v2397_v7 = vadd.f32 %v3267_v25, %v2396_v37  ;;  %v2492_v51 = vadd.f32 1.0, %v3024_v43 }
 0x832   : > { %v2401_v29 = vsel %vm2400_vm15, %v3267_v25, %v2397_v7  ;;  %v2498_v39 = vmul.f32 %v2492_v51, %v2240_v55 }
 0x833   : > { %v2406_v57 = vsel %vm2403_vm0, %v2405_v41, %v2401_v29 }
 0x834   : > { %v2407_v48 = vmul.f32 %v2406_v57, %v2382_v44 }
 0x836   : > { %v3025_v4 = vclamps-f32 %v2407_v48, 1.0  ;;  %v2233_v6 = vpop.f32.mrf.mxu3 }
 0x837   : > { %v4212_v45 = vadd.f32 %v4154_v53, %v2233_v6 }
 0x838   : > { %v2493_v46 = vadd.f32 1.0, %v3025_v4 }
 0x839   : > { %v4217_v58 = vmul.f32 0.70710677, %v4212_v45 }
 0x83a   : > { %v2499_v22 = vmul.f32 %v2493_v46, %v2241_v38 }
 0x83b   : > { %v2410_v54 = vmul.f32 %v4217_v58, %v4217_v58 }
 0x83c   : > { %v2503_v27 = vpack.c.bf16 %v2499_v22, %v2498_v39 }
 0x83d   : > { %v2411_v0 = vmin.f32 %v2410_v54, 16.0 }
 0x83e   : > { %3045 = vmatmul.msk.bf16.gmra.mxu0 %vm2537_vm8, %v2503_v27  ;;  %v2235_v3 = vpop.f32.mrf.mxu3 }
 0x83f   : > { %v2412_v9 = vmul.f32 2.1237322e-06, %v2411_v0  ;;  %v2423_v10 = vmul.f32 3.8918573e-05, %v2411_v0  ;;  %v4223_v50 = vadd.f32 %v4154_v53, %v2235_v3 }
 0x841   : > { %v2413_v61 = vadd.f32 0.00028619796, %v2412_v9  ;;  %v2424_v11 = vadd.f32 0.001143296, %v2423_v10  ;;  %v4226_v8 = vmul.f32 0.70710677, %v4223_v50 }
 0x843   : > { %v2425_v47 = vmul.f32 %v2424_v11, %v2411_v0  ;;  %v2450_v42 = vmul.f32 %v4226_v8, %v4226_v8  ;;  %v2414_v62 = vmul.f32 %v2413_v61, %v2411_v0 }
 0x845   : > { %v2426_v13 = vadd.f32 0.014752088, %v2425_v47  ;;  %v2451_v15 = vmin.f32 %v2450_v42, 16.0  ;;  %v2415_v52 = vadd.f32 0.0036580483, %v2414_v62 }
 0x847   : > { %v2427_v16 = vmul.f32 %v2426_v13, %v2411_v0  ;;  %v2452_v1 = vmul.f32 2.1237322e-06, %v2451_v15  ;;  %v2463_v17 = vmul.f32 3.8918573e-05, %v2451_v15  ;;  %v2416_v24 = vmul.f32 %v2415_v52, %v2411_v0 }
 0x849   : > { %v2428_v2 = vadd.f32 0.112945676, %v2427_v16  ;;  %v2453_v20 = vadd.f32 0.00028619796, %v2452_v1  ;;  %v2464_v53 = vadd.f32 0.001143296, %v2463_v17 }
 0x84a   : > { %v2417_v59 = vadd.f32 0.05243302, %v2416_v24 }
 0x84b   : > { %v2429_v63 = vmul.f32 %v2428_v2, %v2411_v0  ;;  %v2454_v60 = vmul.f32 %v2453_v20, %v2451_v15  ;;  %v2465_v14 = vmul.f32 %v2464_v53, %v2451_v15  ;;  %v2242_v53 = vmul.f32 0.5, %v4212_v45 }
 0x84c   : > { %v2418_v33 = vmul.f32 %v2417_v59, %v2411_v0 }
 0x84d   : > { %v2430_v5 = vadd.f32 0.4994258, %v2429_v63  ;;  %v2455_v25 = vadd.f32 0.0036580483, %v2454_v60  ;;  %v2466_v26 = vadd.f32 0.014752088, %v2465_v14 }
 0x84e   : > { %v2419_v41 = vadd.f32 0.18741608, %v2418_v33  ;;  %v2243_v63 = vmul.f32 0.5, %v4223_v50 }
 0x84f   : > { %v2431_v30 = vmul.f32 %v2430_v5, %v2411_v0  ;;  %v2467_v19 = vmul.f32 %v2466_v26, %v2451_v15  ;;  %v2456_v34 = vmul.f32 %v2455_v25, %v2451_v15 }
 0x850   : > { %v2420_v48 = vmul.f32 %v2419_v41, %v2411_v0 }
 0x851   : > { %v2432_v31 = vadd.f32 1.0, %v2431_v30  ;;  %v2468_v35 = vadd.f32 0.112945676, %v2467_v19  ;;  %v2457_v28 = vadd.f32 0.05243302, %v2456_v34 }
 0x852   : > { %v2421_v46 = vadd.f32 1.1283791, %v2420_v48 }
 0x853   : > { %3268 = vrcp.f32 %v2432_v31  ;;  %v2469_v12 = vmul.f32 %v2468_v35, %v2451_v15  ;;  %v2458_v44 = vmul.f32 %v2457_v28, %v2451_v15  ;;  %v2444_v4 = vand.u32 2147483648, %v2432_v31 }
 0x854   : > { %v2442_v55 = vand.u32 2147483647, %v2432_v31  ;;  %vm2438_vm2 = vweird.f32 %v2432_v31  ;;  %v2422_v10 = vmul.f32 %v2421_v46, %v4217_v58 }
 0x855   : > { %v2470_v37 = vadd.f32 0.4994258, %v2469_v12  ;;  %v2459_v6 = vadd.f32 0.18741608, %v2458_v44  ;;  %v2445_v54 = vor.u32 1.1754944e-38, %v2444_v4 }
 0x856   : > { %vm2443_vm5 = vcmp.eq.f32.partialorder %v2442_v55, 8.507059e+37 }
 0x857   : > { %v2471_v36 = vmul.f32 %v2470_v37, %v2451_v15  ;;  %v2460_v27 = vmul.f32 %v2459_v6, %v2451_v15 }
 0x859   : > { %v3269_v7 = vpop.eup %3268  ;;  %v2472_v29 = vadd.f32 1.0, %v2471_v36  ;;  %v2461_v0 = vadd.f32 1.1283791, %v2460_v27 }
 0x85a   : > { %v2434_v43 = vmul.f32 %v3269_v7, %v2432_v31  ;;  %vm2439_vm1 = vweird.f32 %v3269_v7 }
 0x85b   : > { %3270 = vrcp.f32 %v2472_v29  ;;  %vm2440_vm4 = vmor %vm2438_vm2, %vm2439_vm1  ;;  %v2484_v11 = vand.u32 2147483648, %v2472_v29  ;;  %v2482_v62 = vand.u32 2147483647, %v2472_v29  ;;  %vm2478_vm7 = vweird.f32 %v2472_v29 }
 0x85c   : > { %v2435_v57 = vsub.f32 1.0, %v2434_v43  ;;  %v2462_v15 = vmul.f32 %v2461_v0, %v4226_v8  ;;  %v3185_v8 = vld [vmem:[%s980_s14] ss:$0 sm:$0xff]  ;;  %s4424_s14 = sld [smem:[#allocation9_spill]] }
 0x85d   : > { %v2485_v16 = vor.u32 1.1754944e-38, %v2484_v11  ;;  %vm2483_vm10 = vcmp.eq.f32.partialorder %v2482_v62, 8.507059e+37 }
 0x85e   : > { %v2436_v51 = vmul.f32 %v3269_v7, %v2435_v57 }
 0x860   : > { %v2437_v38 = vadd.f32 %v3269_v7, %v2436_v51 }
 0x861   : > { %v3271_v39 = vpop.eup %3270 }
 0x862   : > { %v2441_v22 = vsel %vm2440_vm4, %v3269_v7, %v2437_v38  ;;  %v2474_v3 = vmul.f32 %v3271_v39, %v2472_v29  ;;  %vm2479_vm6 = vweird.f32 %v3271_v39  ;;  %p3047_p1 = scmp.ne.s32.totalorder %s4424_s14, 1 }
 0x863   : > { %v2446_v9 = vsel %vm2443_vm5, %v2445_v54, %v2441_v22  ;;  %vm2480_vm9 = vmor %vm2478_vm7, %vm2479_vm6  ;;  %s4425_s24 = sld [smem:[#allocation35_spill]] (!%p3047_p1) }
 0x864   : > { %v2475_v61 = vsub.f32 1.0, %v2474_v3  ;;  %v2447_v47 = vmul.f32 %v2446_v9, %v2422_v10  ;;  %s4426_s8 = sld [smem:[#allocation36_spill]] (!%p3047_p1) }
 0x866   : > { %v2476_v42 = vmul.f32 %v3271_v39, %v2475_v61  ;;  %v3026_v1 = vclamps-f32 %v2447_v47, 1.0 }
 0x868   : > { %v2477_v13 = vadd.f32 %v3271_v39, %v2476_v42  ;;  %v2494_v58 = vadd.f32 1.0, %v3026_v1 }
 0x86a   : > { %v2481_v17 = vsel %vm2480_vm9, %v3271_v39, %v2477_v13  ;;  %v2500_v14 = vmul.f32 %v2494_v58, %v2242_v53 }
 0x86b   : > { %v2486_v52 = vsel %vm2483_vm10, %v2485_v16, %v2481_v17 }
 0x86c   : > { %v2487_v2 = vmul.f32 %v2486_v52, %v2462_v15 }
 0x86e   : > { %v3027_v20 = vclamps-f32 %v2487_v2, 1.0 }
 0x870   : > { %v2495_v60 = vadd.f32 1.0, %v3027_v20 }
 0x872   : > { %v2501_v24 = vmul.f32 %v2495_v60, %v2243_v63 }
 0x874   : > { %v2504_v5 = vpack.c.bf16 %v2501_v24, %v2500_v14 }
 0x876   : > { %3046 = vmatmul.msk.bf16.gmra.mxu0 %vm2537_vm8, %v2504_v5 }
 0x892   : > { %v2556_v25 = vpop.f32.mrf.mxu0 }
 0x893   : > { %v2571_v26 = vadd.f32 %v2556_v25, %v4040_v18 }
 0x895   : > { %v2581_v30 = vadd.f32 %v3185_v8, %v2571_v26 }
 0x897   : > { %2587 = vst.msk [vmem:[#allocation2] sm:$0xff] %vm1105_vm3, %v2581_v30 }
 0x89a   : > { %v2558_v45 = vpop.f32.mrf.mxu0 }
 0x89b   : > { %v2572_v50 = vadd.f32 %v2558_v45, %v4044_v56 }
 0x89d   : > { %v2582_v19 = vadd.f32 %v3185_v8, %v2572_v50 }
 0x89f   : > { %2588 = vst.msk [vmem:[#allocation2 + $0x8] sm:$0xff] %vm1105_vm3, %v2582_v19 }
 0x8bb   : > { %v2561_v59 = vpop.f32.mrf.mxu0 }
 0x8bc   : > { %v2573_v31 = vadd.f32 %v2561_v59, %v4048_v21 }
 0x8be   : > { %v2583_v34 = vadd.f32 %v3185_v8, %v2573_v31 }
 0x8c0   : > { %2589 = vst.msk [vmem:[#allocation2 + $0x10] sm:$0xff] %vm1105_vm3, %v2583_v34 }
 0x8c3   : > { %v2563_v35 = vpop.f32.mrf.mxu0 }
 0x8c4   : > { %v2574_v12 = vadd.f32 %v2563_v35, %v4052_v32 }
 0x8c6   : > { %v2584_v33 = vadd.f32 %v3185_v8, %v2574_v12 }
 0x8c8   : > { %2590 = vst.msk [vmem:[#allocation2 + $0x18] sm:$0xff] %vm1105_vm3, %v2584_v33 }
 0x8f3   : > { %v2566_v18 = vpop.f32.mrf.mxu0 }
 0x8f4   : > { %v2575_v28 = vadd.f32 %v2566_v18, %v4056_v23 }
 0x8f6   : > { %v2585_v37 = vadd.f32 %v3185_v8, %v2575_v28 }
 0x8f8   : > { %2591 = vst.msk [vmem:[#allocation2 + $0x20] sm:$0xff] %vm1105_vm3, %v2585_v37 }
 0x8fb   : > { %v2568_v56 = vpop.f32.mrf.mxu0 }
 0x8fc   : > { %v2576_v36 = vadd.f32 %v2568_v56, %v4060_v40  ;;  %2596 = sbr.rel (%p3047_p1) target bundleno = 2587 (0xa1b), region = 120 }
 0x8fe   : > { %v2586_v7 = vadd.f32 %v3185_v8, %v2576_v36 }
 0x900   : > { %2592 = vst.msk [vmem:[#allocation2 + $0x28] sm:$0xff] %vm1105_vm3, %v2586_v7 }
 0x901   : > { %v2601_v21 = vrot.slane %v2584_v33, 7  ;;  %vm2602_vm8 = vcmask 1041409   ;;  %vm2605_vm11 = vcmask 254976   ;;  %v3278_v11 = vld [vmem:[%s4425_s24] ss:$0 sm:$0xff] }
 0x902   : > { %v3279_v62 = vld [vmem:[%s4426_s8] ss:$0 sm:$0xff] }
 0x903   : > { %v2603_v32 = vsel %vm2602_vm8, %v2601_v21, %v2581_v30 }
 0x904   : > { %v2606_v41 = vsel %vm2605_vm11, %v2603_v32, 0.0 }
 0x905   : > { %2607 = vadd.xlane.f32.xlu0 %v2606_v41 }
 0x978   : > { %v2608_v23 = vpop.xlane.xlu0 %2607 }
 0x979   : > { %v2609_v43 = vmul.f32 %v2608_v23, %v3698_v49 }
 0x97b   : > { %v2611_v44 = vrot.slane %v2609_v43, 1  ;;  %v2614_v29 = vsub.f32 %v2581_v30, %v2609_v43 }
 0x97d   : > { %v2615_v40 = vsub.f32 %v2584_v33, %v2611_v44  ;;  %v2616_v48 = vmul.f32 %v2614_v29, %v2614_v29 }
 0x97f   : > { %v2617_v57 = vmul.f32 %v2615_v40, %v2615_v40 }
 0x981   : > { %v2620_v51 = vrot.slane %v2617_v57, 7 }
 0x983   : > { %v2621_v4 = vsel %vm2602_vm8, %v2620_v51, %v2616_v48 }
 0x984   : > { %v2623_v6 = vsel %vm2605_vm11, %v2621_v4, 0.0 }
 0x985   : > { %2624 = vadd.xlane.f32.xlu0 %v2623_v6 }
 0x9f8   : > { %v2625_v55 = vpop.xlane.xlu0 %2624 }
 0x9f9   : > { %v2626_v38 = vmul.f32 %v2625_v55, %v3698_v49 }
 0x9fb   : > { %v2627_v46 = vadd.f32 1e-05, %v2626_v38 }
 0x9fd   : > { %3280 = vrsqrt.f32 %v2627_v46  ;;  %vm2634_vm12 = vweird.f32 %v2627_v46 }
 0xa03   : > { %v3281_v39 = vpop.eup %3280 }
 0xa04   : > { %v2629_v22 = vmul.f32 %v3281_v39, %v2627_v46  ;;  %vm2635_vm3 = vweird.f32 %v3281_v39 }
 0xa05   : > { %vm2636_vm13 = vmor %vm2634_vm12, %vm2635_vm3 }
 0xa06   : > { %v2630_v54 = vmul.f32 %v3281_v39, %v2629_v22 }
 0xa08   : > { %v2631_v27 = vmul.f32 0.5, %v2630_v54 }
 0xa0a   : > { %v2632_v3 = vsub.f32 1.5, %v2631_v27 }
 0xa0c   : > { %v2633_v9 = vmul.f32 %v3281_v39, %v2632_v3 }
 0xa0e   : > { %v2637_v10 = vsel %vm2636_vm13, %v3281_v39, %v2633_v9 }
 0xa0f   : > { %v2639_v61 = vrot.slane %v2637_v10, 1  ;;  %v2642_v0 = vmul.f32 %v2637_v10, %v2614_v29 }
 0xa11   : > { %v2643_v49 = vmul.f32 %v2639_v61, %v2615_v40  ;;  %v2647_v47 = vmul.f32 %v3278_v11, %v2642_v0 }
 0xa13   : > { %v2648_v42 = vmul.f32 %v3278_v11, %v2643_v49  ;;  %v2652_v16 = vadd.f32 %v3279_v62, %v2647_v47 }
 0xa15   : > { %v2653_v13 = vadd.f32 %v3279_v62, %v2648_v42 }
 0xa17   : > { %v2656_v1 = vrot.slane %v2653_v13, 7 }
 0xa19   : > { %v2657_v15 = vsel %vm2602_vm8, %v2656_v1, %v2652_v16 }
 0xa1a   : > { %2659 = vst.msk [vmem:[%s915_s5] sm:$0x3] %vm2605_vm11, %v2657_v15 }
 0xa1b PF: > { %s4427_s7 = sld [smem:[#allocation10_spill]]  ;;  %s2673_s6 = sshll.u32 %s915_s5, 4  ;;  %s2674_s6 = int_to_ptr.vmem [resolvable:$true] %s2673_s6 }
 0xa1c   : > { %s4428_s26 = sld [smem:[#allocation7_spill]] }
 0xa1d   : > { %s4430_s19 = sld [smem:[#allocation37_spill]] }
 0xa21   : > { %s3049_s25 = sshll.u32 %s4427_s7, 1 }
 0xa22   : > { %s4431_s3 = sand.u32 1, %s4428_s26  }
 0xa23   : > { %s2671_s28 = scalar_lea.hbm %s4430_s19, %s3049_s25  ;;  %s2661_s15 = scalar_lea.sflag [#allocation4], %s4431_s3 }
 0xa24   : > { %s2675_s0 = sshll.u32 %s2671_s28, 4  ;;  %s3302_s9 = scalar_lea.hbm %s4430_s19, 4  ;;  %s2676_s0 = int_to_ptr.hbm [resolvable:$true] %s2675_s0 }
 0xa25   : > { %s3296_s23 = sshra.s32 %s2676_s0, 4  ;;  %s3297_s23 = int_to_ptr.hbm [resolvable:$true] %s3296_s23 }
 0xa26   : > { %s3298_s2 = scalar_lea.hbm %s3297_s23, 2  ;;  %p3303_p6 = scmp.lt.s32.totalorder %s3297_s23, %s4430_s19 }
 0xa27   : > { %p3299_p2 = scmp.ne.s32.totalorder %s3297_s23, %s3298_s2  ;;  %p3304_p7 = scmp.lt.s32.totalorder %s3302_s9, %s3298_s2 }
 0xa29   : > { %p3300_p4 = pnand %p3299_p2, %p3551_p3  ;;  %p3305_p8 = por %p3304_p7, %p3303_p6 }
 0xa2b   : > { %p3301_p5 = pneg %p3300_p4 }
 0xa2d   : > { %p3306_p10 = pnand %p3305_p8, %p3301_p5 }
 0xa2f   : > { %3309 = shalt.err (!%p3306_p10)
}
 0xa30   : > { %3085 = dma.vmem_to_hbm [thread:$0]  (%p3551_p3), %s2674_s6, 32, %s2676_s0, %s2661_s15  }
 0xa31 PF: > { %s4432_s1 = sld [smem:[#allocation13_spill]] }
 0xa32   : > { %s4433_s5 = sld [smem:[#allocation6_spill]] }
 0xa37   : > { %p3091_p11 = scmp.ge.s32.totalorder %s4432_s1, 2 }
 0xa38   : > { %s2687_s8 = sand.u32 1, %s4433_s5  }
 0xa39   : > { %p3088_p12 = pnand %p3091_p11, %p3561_p9  ;;  %s2688_s7 = scalar_lea.sflag [#allocation4], %s2687_s8 }
 0xa3b   : > { %p3089_p13 = pneg %p3088_p12 }
 0xa3d   : > { %3343 = dma.done.wait (%p3089_p13), %s2688_s7, 32  }
 0xa3e   : > { %3345 = vsyncadd (%p3089_p13), %s2688_s7, 4294967264  ;;  %s36_s2 = sadd.s32 1, %s4432_s1   ;;  %s4435_s4 = sld [smem:[#allocation7_spill]] }
 0xa3f   : > { %p33_p0 = scmp.ge.s32.totalorder %s36_s2, 6   ;;  %s4436_s30 = sld [smem:[#allocation8_spill]] }
 0xa40   : > { %s4437_s24 = sld [smem:[#allocation18_spill]] }
 0xa41   : > { %s4438_s25 = sld [smem:[#allocation11_spill]]  ;;  %35 = sbr.rel (!%p33_p0) target bundleno = 24 (0x18), region = 203 }
 0xa42   : > { %s4439_s5 = sld [smem:[#allocation12_spill]] }
 0xa43   : > { %s4440_s1 = sld [smem:[#allocation14_spill]] }
 0xa44   : > { %s4441_s26 = sld [smem:[#allocation16_spill]] }
 0xa46   :  { %2694 = vsyncpa [#allocation4], 1 }
 0xa47   :  { %2696 = vsyncpa [#allocation4 + $0x1], 1 }

</bundles_post_ra>
